<compile_context>
chip_gen: v6e
topology: v6e:2x2x1
jax: 0.10.0
libtpu: 0.0.40
codegen_flags: <defaults>
</compile_context>

<pallas_src>
import numpy as np

import jax
import jax.numpy as jnp
from jax import lax
from jax.experimental import pallas as pl
from jax.experimental.pallas import tpu as pltpu

MM_DTYPE = jnp.bfloat16   # MXU operand dtype (accumulation stays f32)


# ---------------------------------------------------------------------------
# Kernels
# ---------------------------------------------------------------------------

def _stage1_kernel(xcat_ref, b1_ref, b2_ref, bias2_ref, y2_ref, part_ref):
    """Conv(1->8,s2,p1)+ReLU, Conv(8->16,s2,p1), BN partial sums.

    xcat_ref : (3, TB*7, 85) bf16 -- conv1 LHS for the three conv1 rows that conv2's
               output row o needs (rows 2o-1, 2o, 2o+1), each row = [3 taps * 28 | flag]
    b1_ref   : (85, 128)  bf16   -- banded conv1 weight (+ bias row, enabled by flag)
    b2_ref   : (384, 128) bf16   -- banded conv2 weight, 3 taps stacked along K
    """
    hs = []
    for g in range(3):                                     # conv1 rows 2o-1 / 2o / 2o+1
        h = jnp.dot(xcat_ref[g], b1_ref[...], preferred_element_type=jnp.float32)
        hs.append(jnp.maximum(h, 0.0).astype(MM_DTYPE))    # (TB*7, 128)  lane = w*8+c
    lhs2 = jnp.concatenate(hs, axis=-1)                    # (TB*7, 384)
    out2 = jnp.dot(lhs2, b2_ref[...],
                   preferred_element_type=jnp.float32) + bias2_ref[...]   # (TB*7, 128)
    y2_ref[...] = out2.astype(jnp.bfloat16)
    # per-step partial sums for the cross-batch BatchNorm statistics (f32, one store)
    s = jnp.sum(out2, axis=0, keepdims=True)
    sq = jnp.sum(out2 * out2, axis=0, keepdims=True)
    part_ref[0] = jnp.concatenate([s, sq], axis=0)         # (2, 128)


def _stage2_kernel(y2cat_ref, scale_ref, shift_ref, b3_ref, bias3_ref,
                   wl1_ref, bl1_ref, wl2_ref, bl2_ref, o_ref):
    """BN+ReLU, Conv(16->32,s2,p0)+ReLU, flatten(NCHW), Linear(288,128)+ReLU, Linear(128,d).

    y2cat_ref : (3, TB, 384) bf16 -- per conv3-output-row h, the three conv2 rows
                2h, 2h+1, 2h+2 concatenated along lanes (lane = w*16+c per tap)
    """
    tb = o_ref.shape[0]
    z = jnp.zeros((tb, 128), jnp.float32)
    for h in range(3):                                     # conv3 output rows
        a = y2cat_ref[h].astype(jnp.float32) * scale_ref[...] + shift_ref[...]
        a = jnp.maximum(a, 0.0).astype(MM_DTYPE)           # BN + ReLU   (TB, 384)
        h3 = jnp.dot(a, b3_ref[...],
                     preferred_element_type=jnp.float32) + bias3_ref[...]
        h3 = jnp.maximum(h3, 0.0).astype(MM_DTYPE)         # conv3 + ReLU (TB, 128)
        z = z + jnp.dot(h3, wl1_ref[h], preferred_element_type=jnp.float32)
    z = jnp.maximum(z + bl1_ref[...], 0.0).astype(MM_DTYPE)          # fc1 + ReLU
    out = jnp.dot(z, wl2_ref[...], preferred_element_type=jnp.float32) + bl2_ref[...]
    o_ref[...] = out                                       # (TB, 128), cols >= d are 0


# ---------------------------------------------------------------------------
# Wrapper
# ---------------------------------------------------------------------------

def _pick_tb(n, cap=128):
    """Images per grid step: largest multiple-of-8 divisor of n that is <= cap and
    <= n//2 (so the grid has >= 2 steps for v7x's two TensorCores); else the whole
    batch in one step (blocks then equal full array dims, which is always legal)."""
    if n >= 16:
        best = 0
        hi = min(cap, n // 2)
        for t in range(8, hi + 1, 8):
            if n % t == 0:
                best = t
        if best:
            return best
    # TODO(synk): batches with no multiple-of-8 divisor fall back to a single grid
    # step (one TensorCore on v7x); fine for small N, pad the batch for huge odd N.
    return n


def _build_conv1_lhs(x2, dtype):
    """x2 (N,28,28) -> (3, N*7, 85) tap-concatenated conv1 LHS, bf16.

    Group 0: conv1 rows 2o-1 (conv2 tap ki=0; o=0 is conv2's zero padding -> flag=0)
    Group 1: conv1 rows 2o   (ki=1),   Group 2: conv1 rows 2o+1 (ki=2)
    Each LHS row = [input rows 2r-1 | 2r | 2r+1 (28 px each, zero-padded) | flag]."""
    n = x2.shape[0]
    xp = jnp.pad(x2, ((0, 0), (3, 0), (0, 0)))             # rows -3..-1 are zeros

    def taps(s):                                            # rows s, s+4, ..., s+24
        return xp[:, s:s + 25:4, :]                         # (n, 7, 28)

    def group(s, o0_valid):
        g = jnp.concatenate([taps(s), taps(s + 1), taps(s + 2)], axis=-1)   # (n,7,84)
        flag = jnp.ones((n, 7, 1), x2.dtype)
        if not o0_valid:
            flag = flag.at[:, 0, :].set(0.0)                # conv1 "row -1" := exactly 0
        return jnp.concatenate([g, flag], axis=-1).reshape(n * 7, 85)

    g0 = group(0, False)        # conv1 rows 2o-1
    g1 = group(2, True)         # conv1 rows 2o
    g2 = group(4, True)         # conv1 rows 2o+1
    return jnp.stack([g0, g1, g2], axis=0).astype(dtype)    # (3, n*7, 85)


def encoder_forward(params, x_nchw, d):
    N = x_nchw.shape[0]
    x2 = x_nchw.reshape(N, 28, 28).astype(jnp.float32)

    TB = _pick_tb(N)
    S = N // TB

    xcat = _build_conv1_lhs(x2, MM_DTYPE)                   # (3, N*7, 85) bf16

    # ---- Stage 1: conv1+ReLU, conv2, BN partial sums -------------------------------
    y2, part = pl.pallas_call(
        _stage1_kernel,
        grid=(S,),
        in_specs=[
            pl.BlockSpec((3, TB * 7, 85), lambda i: (0, i, 0)),
            pl.BlockSpec((85, 128), lambda i: (0, 0)),
            pl.BlockSpec((384, 128), lambda i: (0, 0)),
            pl.BlockSpec((1, 128), lambda i: (0, 0)),
        ],
        out_specs=(
            pl.BlockSpec((TB * 7, 128), lambda i: (i, 0)),
            pl.BlockSpec((1, 2, 128), lambda i: (i, 0, 0)),
        ),
        out_shape=(
            jax.ShapeDtypeStruct((N * 7, 128), jnp.bfloat16),
            jax.ShapeDtypeStruct((S, 2, 128), jnp.float32),
        ),
        compiler_params=pltpu.CompilerParams(dimension_semantics=("parallel",)),
    )(xcat, params["B1aug"], params["B2cat"], params["bias2"])

    # ---- Tiny XLA combine: train-mode BatchNorm statistics (biased variance) -------
    # NOTE: E[x^2]-mean^2 in f32 is fine at this scale; stats use un-rounded f32 sums.
    cnt = jnp.float32(N * 49)
    psum = jnp.sum(part[:, 0, :], axis=0).reshape(8, 16).sum(0)       # sum over w
    psq = jnp.sum(part[:, 1, :], axis=0).reshape(8, 16).sum(0)
    mean = psum / cnt
    var = psq / cnt - mean * mean
    scale = params["gamma"] * lax.rsqrt(var + 1e-5)
    shift = params["beta"] - mean * scale
    scale384 = jnp.tile(scale, 24).reshape(1, 384)
    shift384 = jnp.tile(shift, 24).reshape(1, 384)

    # ---- conv3 LHS: per output row h, conv2 rows 2h,2h+1,2h+2 concatenated ---------
    y2r = y2.reshape(N, 7, 128)
    y2cat = jnp.stack(
        [y2r[:, 2 * h:2 * h + 3, :].reshape(N, 384) for h in range(3)], axis=0)  # (3,N,384)

    # ---- Stage 2: BN+ReLU, conv3+ReLU, flatten, fc1+ReLU, fc2 ----------------------
    out = pl.pallas_call(
        _stage2_kernel,
        grid=(S,),
        in_specs=[
            pl.BlockSpec((3, TB, 384), lambda i: (0, i, 0)),
            pl.BlockSpec((1, 384), lambda i: (0, 0)),
            pl.BlockSpec((1, 384), lambda i: (0, 0)),
            pl.BlockSpec((384, 128), lambda i: (0, 0)),
            pl.BlockSpec((1, 128), lambda i: (0, 0)),
            pl.BlockSpec((3, 128, 128), lambda i: (0, 0, 0)),
            pl.BlockSpec((1, 128), lambda i: (0, 0)),
            pl.BlockSpec((128, 128), lambda i: (0, 0)),
            pl.BlockSpec((1, 128), lambda i: (0, 0)),
        ],
        out_specs=pl.BlockSpec((TB, 128), lambda i: (i, 0)),
        out_shape=jax.ShapeDtypeStruct((N, 128), jnp.float32),
        compiler_params=pltpu.CompilerParams(dimension_semantics=("parallel",)),
    )(y2cat, scale384, shift384, params["B3cat"], params["bias3"],
      params["wl1"], params["bl1"], params["wl2"], params["bl2"])

    return out[:, :d]


# ---------------------------------------------------------------------------
# Parameter construction (raw PyTorch-layout weights -> kernel operands)
# ---------------------------------------------------------------------------

def _band(w4, w_in_real, w_in_pad, w_out_real, w_out_pad, pad, stride):
    """w4 (kh,kw,Cin,Cout) -> (kh, w_in_pad*Cin, w_out_pad*Cout) banded matrices:
       M[ki, wi*Cin+ci, wo*Cout+co] = w4[ki, wi+pad-stride*wo, ci, co] inside the
       valid band (and wi<w_in_real, wo<w_out_real), 0 elsewhere (incl. padding)."""
    w4 = np.asarray(w4, np.float32)
    kh, kw, cin, cout = w4.shape
    wi = np.arange(w_in_pad)[:, None]
    wo = np.arange(w_out_pad)[None, :]
    kj = wi + pad - stride * wo
    valid = (kj >= 0) & (kj < kw) & (wi < w_in_real) & (wo < w_out_real)
    kj_c = np.clip(kj, 0, kw - 1)
    mats = []
    for ki in range(kh):
        g = w4[ki][kj_c]                                   # (w_in_pad, w_out_pad, cin, cout)
        g = np.where(valid[:, :, None, None], g, 0.0)
        g = np.transpose(g, (0, 2, 1, 3)).reshape(w_in_pad * cin, w_out_pad * cout)
        mats.append(g)
    return np.stack(mats, 0)


def init_raw_params(key, encoded_space_dim):
    ks = jax.random.split(key, 10)
    return {
        "w1": 0.1 * jax.random.normal(ks[0], (3, 3, 1, 8), jnp.float32),     # HWIO
        "b1": 0.1 * jax.random.normal(ks[1], (8,), jnp.float32),
        "w2": 0.1 * jax.random.normal(ks[2], (3, 3, 8, 16), jnp.float32),
        "b2": 0.1 * jax.random.normal(ks[3], (16,), jnp.float32),
        "gamma": jnp.ones((16,), jnp.float32),
        "beta": jnp.zeros((16,), jnp.float32),
        "w3": 0.1 * jax.random.normal(ks[4], (3, 3, 16, 32), jnp.float32),
        "b3": 0.1 * jax.random.normal(ks[5], (32,), jnp.float32),
        # fc1 weight rows are in PyTorch NCHW-flatten order: c*9 + h*3 + w
        "wl1": 0.1 * jax.random.normal(ks[6], (288, 128), jnp.float32),
        "bl1": 0.1 * jax.random.normal(ks[7], (128,), jnp.float32),
        "wl2": 0.1 * jax.random.normal(ks[8], (128, encoded_space_dim), jnp.float32),
        "bl2": 0.1 * jax.random.normal(ks[9], (encoded_space_dim,), jnp.float32),
    }


def prepare_params(raw, dtype=MM_DTYPE):
    d = raw["wl2"].shape[-1]
    b1 = np.asarray(raw["b1"], np.float32)
    b2 = np.asarray(raw["b2"], np.float32)
    b3 = np.asarray(raw["b3"], np.float32)

    # conv1: 28 cols -> 14 (padded to 16) cols, out lanes = w*8 + c (128 lanes)
    B1 = _band(raw["w1"], 28, 28, 14, 16, pad=1, stride=2).reshape(84, 128)
    bias1_row = np.tile(b1, 16)
    bias1_row[14 * 8:] = 0.0                               # padded output lanes stay 0
    B1aug = np.concatenate([B1, bias1_row[None, :]], axis=0)          # (85, 128)

    # conv2: 14 (padded 16) cols -> 7 (padded 8), in lanes w*8+c, out lanes w*16+c
    B2cat = _band(raw["w2"], 14, 16, 7, 8, pad=1, stride=2).reshape(384, 128)
    bias2 = np.tile(b2, 8)
    bias2[7 * 16:] = 0.0

    # conv3: 7 (padded 8) cols -> 3 (padded 4), in lanes w*16+c, out lanes w*32+c
    B3cat = _band(raw["w3"], 7, 8, 3, 4, pad=0, stride=2).reshape(384, 128)
    bias3 = np.tile(b3, 4)
    bias3[3 * 32:] = 0.0

    # fc1: fold NCHW flatten permutation, rows indexed by (h, w*32+c), w=3 pad -> 0
    wl1 = np.asarray(raw["wl1"], np.float32)
    wl1r = np.zeros((3, 128, 128), np.float32)
    for h in range(3):
        for w in range(3):
            for c in range(32):
                wl1r[h, w * 32 + c, :] = wl1[c * 9 + h * 3 + w, :]

    # fc2: pad output columns to 128 (sliced back to d in the wrapper)
    wl2 = np.asarray(raw["wl2"], np.float32)
    wl2p = np.zeros((128, 128), np.float32)
    wl2p[:, :d] = wl2
    bl2 = np.zeros((1, 128), np.float32)
    bl2[0, :d] = np.asarray(raw["bl2"], np.float32)

    return {
        "B1aug": jnp.asarray(B1aug, dtype),
        "B2cat": jnp.asarray(B2cat, dtype),
        "bias2": jnp.asarray(bias2, jnp.float32).reshape(1, 128),
        "B3cat": jnp.asarray(B3cat, dtype),
        "bias3": jnp.asarray(bias3, jnp.float32).reshape(1, 128),
        "wl1": jnp.asarray(wl1r, dtype),
        "bl1": jnp.asarray(raw["bl1"], jnp.float32).reshape(1, 128),
        "wl2": jnp.asarray(wl2p, dtype),
        "bl2": jnp.asarray(bl2, jnp.float32),
        "gamma": raw["gamma"],
        "beta": raw["beta"],
    }


# ---------------------------------------------------------------------------
# Pure-JAX f32 reference (matches the PyTorch Encoder forward, BN in train mode)
# ---------------------------------------------------------------------------

def encoder_reference(raw, x_nchw):
    def conv(x, w, b, stride, pad):
        y = lax.conv_general_dilated(
            x, w, (stride, stride), [(pad, pad), (pad, pad)],
            dimension_numbers=("NCHW", "HWIO", "NCHW"))
        return y + b.reshape(1, -1, 1, 1)

    y = jax.nn.relu(conv(x_nchw, raw["w1"], raw["b1"], 2, 1))
    y = conv(y, raw["w2"], raw["b2"], 2, 1)
    mean = y.mean(axis=(0, 2, 3), keepdims=True)
    var = ((y - mean) ** 2).mean(axis=(0, 2, 3), keepdims=True)     # biased (train mode)
    y = (y - mean) * lax.rsqrt(var + 1e-5)
    y = jax.nn.relu(y * raw["gamma"].reshape(1, -1, 1, 1) + raw["beta"].reshape(1, -1, 1, 1))
    y = jax.nn.relu(conv(y, raw["w3"], raw["b3"], 2, 0))
    y = y.reshape(y.shape[0], -1)                                   # torch.flatten(x, 1)
    y = jax.nn.relu(y @ raw["wl1"] + raw["bl1"])
    return y @ raw["wl2"] + raw["bl2"]


if __name__ == "__main__":
    encoded_space_dim = 16
    key = jax.random.PRNGKey(0)
    kx, kp = jax.random.split(key)

    # PyTorch-style NCHW input: batch=2, 1 channel, 28x28 (required for the 3*3*32 flatten)
    x = jax.random.normal(kx, (2, 1, 28, 28), jnp.float32)
    raw = init_raw_params(kp, encoded_space_dim)
    params = prepare_params(raw)

    fwd = jax.jit(lambda p, xx: encoder_forward(p, xx, encoded_space_dim))
    out = jax.block_until_ready(fwd(params, x))
    assert out.shape == (2, encoded_space_dim), out.shape
    assert bool(jnp.all(jnp.isfinite(out)))

    # Validate against the pure-JAX f32 reference (kernel uses bf16 MXU operands);
    # scale-aware tolerance so a layout/padding bug is not masked.
    ref = encoder_reference(raw, x)
    err = float(jnp.max(jnp.abs(out - ref)))
    ref_scale = float(jnp.max(jnp.abs(ref)))
    assert err <= 0.03 * max(1.0, ref_scale) + 0.03, \
        f"max abs err {err} vs reference scale {ref_scale}"

    print("KERNEL_OK")
</pallas_src>

<mosaic_0001>
module attributes {stable_mosaic.version = 11 : i64} {
  func.func @_stage1_kernel(%arg0: i32, %arg1: memref<3x14x85xbf16, #tpu.memory_space<vmem>>, %arg2: memref<85x128xbf16, #tpu.memory_space<vmem>>, %arg3: memref<384x128xbf16, #tpu.memory_space<vmem>>, %arg4: memref<1x128xf32, #tpu.memory_space<vmem>>, %arg5: memref<14x128xbf16, #tpu.memory_space<vmem>>, %arg6: memref<1x2x128xf32, #tpu.memory_space<vmem>>) attributes {dimension_semantics = [#tpu.dimension_semantics<parallel>], iteration_bounds = array<i64: 1>, scalar_prefetch = 0 : i64, scratch_operands = 0 : i64, tpu.core_type = #tpu.core_type<tc>, window_params = [{transform_indices = @transform_0, window_bounds = array<i64: 3, 14, 85>}, {pipeline_mode = #tpu.pipeline_mode<synchronous>, transform_indices = @transform_1, window_bounds = array<i64: 85, 128>}, {pipeline_mode = #tpu.pipeline_mode<synchronous>, transform_indices = @transform_2, window_bounds = array<i64: 384, 128>}, {pipeline_mode = #tpu.pipeline_mode<synchronous>, transform_indices = @transform_3, window_bounds = array<i64: 1, 128>}, {transform_indices = @transform_4, window_bounds = array<i64: 14, 128>}, {transform_indices = @transform_5, window_bounds = array<i64: 1, 2, 128>}]} {
    %c0 = arith.constant 0 : index
    %c0_0 = arith.constant 0 : index
    %c0_1 = arith.constant 0 : index
    %0 = vector.load %arg1[%c0, %c0_0, %c0_1] : memref<3x14x85xbf16, #tpu.memory_space<vmem>>, vector<1x14x85xbf16>
    %1 = vector.shape_cast %0 : vector<1x14x85xbf16> to vector<14x85xbf16>
    %c0_2 = arith.constant 0 : index
    %c0_3 = arith.constant 0 : index
    %2 = vector.load %arg2[%c0_2, %c0_3] : memref<85x128xbf16, #tpu.memory_space<vmem>>, vector<85x128xbf16>
    %cst = arith.constant dense<0.000000e+00> : vector<14x128xf32>
    %3 = tpu.matmul %1, %2, %cst {dimension_numbers = #tpu.dot_dimension_numbers<[1], [0], [0], [1], [0, 0, 1, 1], [], []>} : vector<14x85xbf16>, vector<85x128xbf16>, vector<14x128xf32> -> vector<14x128xf32>
    %cst_4 = arith.constant 0.000000e+00 : f32
    %4 = vector.broadcast %cst_4 : f32 to vector<14x128xf32>
    %5 = arith.maximumf %3, %4 : vector<14x128xf32>
    %6 = arith.truncf %5 : vector<14x128xf32> to vector<14x128xbf16>
    %c1 = arith.constant 1 : index
    %c0_5 = arith.constant 0 : index
    %c0_6 = arith.constant 0 : index
    %7 = vector.load %arg1[%c1, %c0_5, %c0_6] : memref<3x14x85xbf16, #tpu.memory_space<vmem>>, vector<1x14x85xbf16>
    %8 = vector.shape_cast %7 : vector<1x14x85xbf16> to vector<14x85xbf16>
    %c0_7 = arith.constant 0 : index
    %c0_8 = arith.constant 0 : index
    %9 = vector.load %arg2[%c0_7, %c0_8] : memref<85x128xbf16, #tpu.memory_space<vmem>>, vector<85x128xbf16>
    %cst_9 = arith.constant dense<0.000000e+00> : vector<14x128xf32>
    %10 = tpu.matmul %8, %9, %cst_9 {dimension_numbers = #tpu.dot_dimension_numbers<[1], [0], [0], [1], [0, 0, 1, 1], [], []>} : vector<14x85xbf16>, vector<85x128xbf16>, vector<14x128xf32> -> vector<14x128xf32>
    %cst_10 = arith.constant 0.000000e+00 : f32
    %11 = vector.broadcast %cst_10 : f32 to vector<14x128xf32>
    %12 = arith.maximumf %10, %11 : vector<14x128xf32>
    %13 = arith.truncf %12 : vector<14x128xf32> to vector<14x128xbf16>
    %c2 = arith.constant 2 : index
    %c0_11 = arith.constant 0 : index
    %c0_12 = arith.constant 0 : index
    %14 = vector.load %arg1[%c2, %c0_11, %c0_12] : memref<3x14x85xbf16, #tpu.memory_space<vmem>>, vector<1x14x85xbf16>
    %15 = vector.shape_cast %14 : vector<1x14x85xbf16> to vector<14x85xbf16>
    %c0_13 = arith.constant 0 : index
    %c0_14 = arith.constant 0 : index
    %16 = vector.load %arg2[%c0_13, %c0_14] : memref<85x128xbf16, #tpu.memory_space<vmem>>, vector<85x128xbf16>
    %cst_15 = arith.constant dense<0.000000e+00> : vector<14x128xf32>
    %17 = tpu.matmul %15, %16, %cst_15 {dimension_numbers = #tpu.dot_dimension_numbers<[1], [0], [0], [1], [0, 0, 1, 1], [], []>} : vector<14x85xbf16>, vector<85x128xbf16>, vector<14x128xf32> -> vector<14x128xf32>
    %cst_16 = arith.constant 0.000000e+00 : f32
    %18 = vector.broadcast %cst_16 : f32 to vector<14x128xf32>
    %19 = arith.maximumf %17, %18 : vector<14x128xf32>
    %20 = arith.truncf %19 : vector<14x128xf32> to vector<14x128xbf16>
    %21 = tpu.concatenate %6, %13, %20 in 1 : vector<14x128xbf16>, vector<14x128xbf16>, vector<14x128xbf16> -> vector<14x384xbf16>
    %c0_17 = arith.constant 0 : index
    %c0_18 = arith.constant 0 : index
    %22 = vector.load %arg3[%c0_17, %c0_18] : memref<384x128xbf16, #tpu.memory_space<vmem>>, vector<384x128xbf16>
    %cst_19 = arith.constant dense<0.000000e+00> : vector<14x128xf32>
    %23 = tpu.matmul %21, %22, %cst_19 {dimension_numbers = #tpu.dot_dimension_numbers<[1], [0], [0], [1], [0, 0, 1, 1], [], []>} : vector<14x384xbf16>, vector<384x128xbf16>, vector<14x128xf32> -> vector<14x128xf32>
    %c0_20 = arith.constant 0 : index
    %c0_21 = arith.constant 0 : index
    %24 = vector.load %arg4[%c0_20, %c0_21] : memref<1x128xf32, #tpu.memory_space<vmem>>, vector<1x128xf32>
    %25 = vector.broadcast %24 : vector<1x128xf32> to vector<14x128xf32>
    %26 = arith.addf %23, %25 : vector<14x128xf32>
    %27 = arith.truncf %26 : vector<14x128xf32> to vector<14x128xbf16>
    %c0_22 = arith.constant 0 : index
    %c0_23 = arith.constant 0 : index
    %28 = vector.load %arg5[%c0_22, %c0_23] : memref<14x128xbf16, #tpu.memory_space<vmem>>, vector<14x128xbf16>
    tpu.vector_store %arg5[%c0_22, %c0_23], %27 {strides = array<i32>} : memref<14x128xbf16, #tpu.memory_space<vmem>>, vector<14x128xbf16>,
    %cst_24 = arith.constant dense<0.000000e+00> : vector<128xf32>
    %29 = vector.multi_reduction <add>, %26, %cst_24 [0] : vector<14x128xf32> to vector<128xf32>
    %30 = vector.shape_cast %29 : vector<128xf32> to vector<1x128xf32>
    %31 = arith.mulf %26, %26 : vector<14x128xf32>
    %cst_25 = arith.constant dense<0.000000e+00> : vector<128xf32>
    %32 = vector.multi_reduction <add>, %31, %cst_25 [0] : vector<14x128xf32> to vector<128xf32>
    %33 = vector.shape_cast %32 : vector<128xf32> to vector<1x128xf32>
    %34 = tpu.concatenate %30, %33 in 0 : vector<1x128xf32>, vector<1x128xf32> -> vector<2x128xf32>
    %c0_26 = arith.constant 0 : index
    %c0_27 = arith.constant 0 : index
    %c0_28 = arith.constant 0 : index
    %35 = vector.load %arg6[%c0_26, %c0_27, %c0_28] : memref<1x2x128xf32, #tpu.memory_space<vmem>>, vector<1x2x128xf32>
    %36 = vector.shape_cast %35 : vector<1x2x128xf32> to vector<2x128xf32>
    %37 = vector.shape_cast %34 : vector<2x128xf32> to vector<1x2x128xf32>
    tpu.vector_store %arg6[%c0_26, %c0_27, %c0_28], %37 {strides = array<i32>} : memref<1x2x128xf32, #tpu.memory_space<vmem>>, vector<1x2x128xf32>,
    return
  }
  func.func @transform_0(%arg0: i32) -> (i32, i32, i32) {
    %c0_i32 = arith.constant 0 : i32
    %c0_i32_0 = arith.constant 0 : i32
    %c0_i32_1 = arith.constant 0 : i32
    return %c0_i32, %arg0, %c0_i32_0 : i32, i32, i32
  }
  func.func @transform_1(%arg0: i32) -> (i32, i32) {
    %c0_i32 = arith.constant 0 : i32
    %c0_i32_0 = arith.constant 0 : i32
    %c0_i32_1 = arith.constant 0 : i32
    return %c0_i32, %c0_i32_0 : i32, i32
  }
  func.func @transform_2(%arg0: i32) -> (i32, i32) {
    %c0_i32 = arith.constant 0 : i32
    %c0_i32_0 = arith.constant 0 : i32
    %c0_i32_1 = arith.constant 0 : i32
    return %c0_i32, %c0_i32_0 : i32, i32
  }
  func.func @transform_3(%arg0: i32) -> (i32, i32) {
    %c0_i32 = arith.constant 0 : i32
    %c0_i32_0 = arith.constant 0 : i32
    %c0_i32_1 = arith.constant 0 : i32
    return %c0_i32, %c0_i32_0 : i32, i32
  }
  func.func @transform_4(%arg0: i32) -> (i32, i32) {
    %c0_i32 = arith.constant 0 : i32
    %c0_i32_0 = arith.constant 0 : i32
    return %arg0, %c0_i32 : i32, i32
  }
  func.func @transform_5(%arg0: i32) -> (i32, i32, i32) {
    %c0_i32 = arith.constant 0 : i32
    %c0_i32_0 = arith.constant 0 : i32
    %c0_i32_1 = arith.constant 0 : i32
    return %arg0, %c0_i32, %c0_i32_0 : i32, i32, i32
  }
}

module attributes {stable_mosaic.version = 11 : i64} {
  func.func @_stage2_kernel(%arg0: i32, %arg1: memref<3x2x384xbf16, #tpu.memory_space<vmem>>, %arg2: memref<1x384xf32, #tpu.memory_space<vmem>>, %arg3: memref<1x384xf32, #tpu.memory_space<vmem>>, %arg4: memref<384x128xbf16, #tpu.memory_space<vmem>>, %arg5: memref<1x128xf32, #tpu.memory_space<vmem>>, %arg6: memref<3x128x128xbf16, #tpu.memory_space<vmem>>, %arg7: memref<1x128xf32, #tpu.memory_space<vmem>>, %arg8: memref<128x128xbf16, #tpu.memory_space<vmem>>, %arg9: memref<1x128xf32, #tpu.memory_space<vmem>>, %arg10: memref<2x128xf32, #tpu.memory_space<vmem>>) attributes {dimension_semantics = [#tpu.dimension_semantics<parallel>], iteration_bounds = array<i64: 1>, scalar_prefetch = 0 : i64, scratch_operands = 0 : i64, tpu.core_type = #tpu.core_type<tc>, window_params = [{transform_indices = @transform_0, window_bounds = array<i64: 3, 2, 384>}, {pipeline_mode = #tpu.pipeline_mode<synchronous>, transform_indices = @transform_1, window_bounds = array<i64: 1, 384>}, {pipeline_mode = #tpu.pipeline_mode<synchronous>, transform_indices = @transform_2, window_bounds = array<i64: 1, 384>}, {pipeline_mode = #tpu.pipeline_mode<synchronous>, transform_indices = @transform_3, window_bounds = array<i64: 384, 128>}, {pipeline_mode = #tpu.pipeline_mode<synchronous>, transform_indices = @transform_4, window_bounds = array<i64: 1, 128>}, {pipeline_mode = #tpu.pipeline_mode<synchronous>, transform_indices = @transform_5, window_bounds = array<i64: 3, 128, 128>}, {pipeline_mode = #tpu.pipeline_mode<synchronous>, transform_indices = @transform_6, window_bounds = array<i64: 1, 128>}, {pipeline_mode = #tpu.pipeline_mode<synchronous>, transform_indices = @transform_7, window_bounds = array<i64: 128, 128>}, {pipeline_mode = #tpu.pipeline_mode<synchronous>, transform_indices = @transform_8, window_bounds = array<i64: 1, 128>}, {transform_indices = @transform_9, window_bounds = array<i64: 2, 128>}]} {
    %cst = arith.constant 0.000000e+00 : f32
    %0 = vector.broadcast %cst : f32 to vector<2x128xf32>
    %c0 = arith.constant 0 : index
    %c0_0 = arith.constant 0 : index
    %c0_1 = arith.constant 0 : index
    %1 = vector.load %arg1[%c0, %c0_0, %c0_1] : memref<3x2x384xbf16, #tpu.memory_space<vmem>>, vector<1x2x384xbf16>
    %2 = vector.shape_cast %1 : vector<1x2x384xbf16> to vector<2x384xbf16>
    %3 = arith.extf %2 : vector<2x384xbf16> to vector<2x384xf32>
    %c0_2 = arith.constant 0 : index
    %c0_3 = arith.constant 0 : index
    %4 = vector.load %arg2[%c0_2, %c0_3] : memref<1x384xf32, #tpu.memory_space<vmem>>, vector<1x384xf32>
    %5 = vector.broadcast %4 : vector<1x384xf32> to vector<2x384xf32>
    %6 = arith.mulf %3, %5 : vector<2x384xf32>
    %c0_4 = arith.constant 0 : index
    %c0_5 = arith.constant 0 : index
    %7 = vector.load %arg3[%c0_4, %c0_5] : memref<1x384xf32, #tpu.memory_space<vmem>>, vector<1x384xf32>
    %8 = vector.broadcast %7 : vector<1x384xf32> to vector<2x384xf32>
    %9 = arith.addf %6, %8 : vector<2x384xf32>
    %cst_6 = arith.constant 0.000000e+00 : f32
    %10 = vector.broadcast %cst_6 : f32 to vector<2x384xf32>
    %11 = arith.maximumf %9, %10 : vector<2x384xf32>
    %12 = arith.truncf %11 : vector<2x384xf32> to vector<2x384xbf16>
    %c0_7 = arith.constant 0 : index
    %c0_8 = arith.constant 0 : index
    %13 = vector.load %arg4[%c0_7, %c0_8] : memref<384x128xbf16, #tpu.memory_space<vmem>>, vector<384x128xbf16>
    %cst_9 = arith.constant dense<0.000000e+00> : vector<2x128xf32>
    %14 = tpu.matmul %12, %13, %cst_9 {dimension_numbers = #tpu.dot_dimension_numbers<[1], [0], [0], [1], [0, 0, 1, 1], [], []>} : vector<2x384xbf16>, vector<384x128xbf16>, vector<2x128xf32> -> vector<2x128xf32>
    %c0_10 = arith.constant 0 : index
    %c0_11 = arith.constant 0 : index
    %15 = vector.load %arg5[%c0_10, %c0_11] : memref<1x128xf32, #tpu.memory_space<vmem>>, vector<1x128xf32>
    %16 = vector.broadcast %15 : vector<1x128xf32> to vector<2x128xf32>
    %17 = arith.addf %14, %16 : vector<2x128xf32>
    %cst_12 = arith.constant 0.000000e+00 : f32
    %18 = vector.broadcast %cst_12 : f32 to vector<2x128xf32>
    %19 = arith.maximumf %17, %18 : vector<2x128xf32>
    %20 = arith.truncf %19 : vector<2x128xf32> to vector<2x128xbf16>
    %c0_13 = arith.constant 0 : index
    %c0_14 = arith.constant 0 : index
    %c0_15 = arith.constant 0 : index
    %21 = vector.load %arg6[%c0_13, %c0_14, %c0_15] : memref<3x128x128xbf16, #tpu.memory_space<vmem>>, vector<1x128x128xbf16>
    %22 = vector.shape_cast %21 : vector<1x128x128xbf16> to vector<128x128xbf16>
    %cst_16 = arith.constant dense<0.000000e+00> : vector<2x128xf32>
    %23 = tpu.matmul %20, %22, %cst_16 {dimension_numbers = #tpu.dot_dimension_numbers<[1], [0], [0], [1], [0, 0, 1, 1], [], []>} : vector<2x128xbf16>, vector<128x128xbf16>, vector<2x128xf32> -> vector<2x128xf32>
    %24 = arith.addf %0, %23 : vector<2x128xf32>
    %c1 = arith.constant 1 : index
    %c0_17 = arith.constant 0 : index
    %c0_18 = arith.constant 0 : index
    %25 = vector.load %arg1[%c1, %c0_17, %c0_18] : memref<3x2x384xbf16, #tpu.memory_space<vmem>>, vector<1x2x384xbf16>
    %26 = vector.shape_cast %25 : vector<1x2x384xbf16> to vector<2x384xbf16>
    %27 = arith.extf %26 : vector<2x384xbf16> to vector<2x384xf32>
    %c0_19 = arith.constant 0 : index
    %c0_20 = arith.constant 0 : index
    %28 = vector.load %arg2[%c0_19, %c0_20] : memref<1x384xf32, #tpu.memory_space<vmem>>, vector<1x384xf32>
    %29 = vector.broadcast %28 : vector<1x384xf32> to vector<2x384xf32>
    %30 = arith.mulf %27, %29 : vector<2x384xf32>
    %c0_21 = arith.constant 0 : index
    %c0_22 = arith.constant 0 : index
    %31 = vector.load %arg3[%c0_21, %c0_22] : memref<1x384xf32, #tpu.memory_space<vmem>>, vector<1x384xf32>
    %32 = vector.broadcast %31 : vector<1x384xf32> to vector<2x384xf32>
    %33 = arith.addf %30, %32 : vector<2x384xf32>
    %cst_23 = arith.constant 0.000000e+00 : f32
    %34 = vector.broadcast %cst_23 : f32 to vector<2x384xf32>
    %35 = arith.maximumf %33, %34 : vector<2x384xf32>
    %36 = arith.truncf %35 : vector<2x384xf32> to vector<2x384xbf16>
    %c0_24 = arith.constant 0 : index
    %c0_25 = arith.constant 0 : index
    %37 = vector.load %arg4[%c0_24, %c0_25] : memref<384x128xbf16, #tpu.memory_space<vmem>>, vector<384x128xbf16>
    %cst_26 = arith.constant dense<0.000000e+00> : vector<2x128xf32>
    %38 = tpu.matmul %36, %37, %cst_26 {dimension_numbers = #tpu.dot_dimension_numbers<[1], [0], [0], [1], [0, 0, 1, 1], [], []>} : vector<2x384xbf16>, vector<384x128xbf16>, vector<2x128xf32> -> vector<2x128xf32>
    %c0_27 = arith.constant 0 : index
    %c0_28 = arith.constant 0 : index
    %39 = vector.load %arg5[%c0_27, %c0_28] : memref<1x128xf32, #tpu.memory_space<vmem>>, vector<1x128xf32>
    %40 = vector.broadcast %39 : vector<1x128xf32> to vector<2x128xf32>
    %41 = arith.addf %38, %40 : vector<2x128xf32>
    %cst_29 = arith.constant 0.000000e+00 : f32
    %42 = vector.broadcast %cst_29 : f32 to vector<2x128xf32>
    %43 = arith.maximumf %41, %42 : vector<2x128xf32>
    %44 = arith.truncf %43 : vector<2x128xf32> to vector<2x128xbf16>
    %c1_30 = arith.constant 1 : index
    %c0_31 = arith.constant 0 : index
    %c0_32 = arith.constant 0 : index
    %45 = vector.load %arg6[%c1_30, %c0_31, %c0_32] : memref<3x128x128xbf16, #tpu.memory_space<vmem>>, vector<1x128x128xbf16>
    %46 = vector.shape_cast %45 : vector<1x128x128xbf16> to vector<128x128xbf16>
    %cst_33 = arith.constant dense<0.000000e+00> : vector<2x128xf32>
    %47 = tpu.matmul %44, %46, %cst_33 {dimension_numbers = #tpu.dot_dimension_numbers<[1], [0], [0], [1], [0, 0, 1, 1], [], []>} : vector<2x128xbf16>, vector<128x128xbf16>, vector<2x128xf32> -> vector<2x128xf32>
    %48 = arith.addf %24, %47 : vector<2x128xf32>
    %c2 = arith.constant 2 : index
    %c0_34 = arith.constant 0 : index
    %c0_35 = arith.constant 0 : index
    %49 = vector.load %arg1[%c2, %c0_34, %c0_35] : memref<3x2x384xbf16, #tpu.memory_space<vmem>>, vector<1x2x384xbf16>
    %50 = vector.shape_cast %49 : vector<1x2x384xbf16> to vector<2x384xbf16>
    %51 = arith.extf %50 : vector<2x384xbf16> to vector<2x384xf32>
    %c0_36 = arith.constant 0 : index
    %c0_37 = arith.constant 0 : index
    %52 = vector.load %arg2[%c0_36, %c0_37] : memref<1x384xf32, #tpu.memory_space<vmem>>, vector<1x384xf32>
    %53 = vector.broadcast %52 : vector<1x384xf32> to vector<2x384xf32>
    %54 = arith.mulf %51, %53 : vector<2x384xf32>
    %c0_38 = arith.constant 0 : index
    %c0_39 = arith.constant 0 : index
    %55 = vector.load %arg3[%c0_38, %c0_39] : memref<1x384xf32, #tpu.memory_space<vmem>>, vector<1x384xf32>
    %56 = vector.broadcast %55 : vector<1x384xf32> to vector<2x384xf32>
    %57 = arith.addf %54, %56 : vector<2x384xf32>
    %cst_40 = arith.constant 0.000000e+00 : f32
    %58 = vector.broadcast %cst_40 : f32 to vector<2x384xf32>
    %59 = arith.maximumf %57, %58 : vector<2x384xf32>
    %60 = arith.truncf %59 : vector<2x384xf32> to vector<2x384xbf16>
    %c0_41 = arith.constant 0 : index
    %c0_42 = arith.constant 0 : index
    %61 = vector.load %arg4[%c0_41, %c0_42] : memref<384x128xbf16, #tpu.memory_space<vmem>>, vector<384x128xbf16>
    %cst_43 = arith.constant dense<0.000000e+00> : vector<2x128xf32>
    %62 = tpu.matmul %60, %61, %cst_43 {dimension_numbers = #tpu.dot_dimension_numbers<[1], [0], [0], [1], [0, 0, 1, 1], [], []>} : vector<2x384xbf16>, vector<384x128xbf16>, vector<2x128xf32> -> vector<2x128xf32>
    %c0_44 = arith.constant 0 : index
    %c0_45 = arith.constant 0 : index
    %63 = vector.load %arg5[%c0_44, %c0_45] : memref<1x128xf32, #tpu.memory_space<vmem>>, vector<1x128xf32>
    %64 = vector.broadcast %63 : vector<1x128xf32> to vector<2x128xf32>
    %65 = arith.addf %62, %64 : vector<2x128xf32>
    %cst_46 = arith.constant 0.000000e+00 : f32
    %66 = vector.broadcast %cst_46 : f32 to vector<2x128xf32>
    %67 = arith.maximumf %65, %66 : vector<2x128xf32>
    %68 = arith.truncf %67 : vector<2x128xf32> to vector<2x128xbf16>
    %c2_47 = arith.constant 2 : index
    %c0_48 = arith.constant 0 : index
    %c0_49 = arith.constant 0 : index
    %69 = vector.load %arg6[%c2_47, %c0_48, %c0_49] : memref<3x128x128xbf16, #tpu.memory_space<vmem>>, vector<1x128x128xbf16>
    %70 = vector.shape_cast %69 : vector<1x128x128xbf16> to vector<128x128xbf16>
    %cst_50 = arith.constant dense<0.000000e+00> : vector<2x128xf32>
    %71 = tpu.matmul %68, %70, %cst_50 {dimension_numbers = #tpu.dot_dimension_numbers<[1], [0], [0], [1], [0, 0, 1, 1], [], []>} : vector<2x128xbf16>, vector<128x128xbf16>, vector<2x128xf32> -> vector<2x128xf32>
    %72 = arith.addf %48, %71 : vector<2x128xf32>
    %c0_51 = arith.constant 0 : index
    %c0_52 = arith.constant 0 : index
    %73 = vector.load %arg7[%c0_51, %c0_52] : memref<1x128xf32, #tpu.memory_space<vmem>>, vector<1x128xf32>
    %74 = vector.broadcast %73 : vector<1x128xf32> to vector<2x128xf32>
    %75 = arith.addf %72, %74 : vector<2x128xf32>
    %cst_53 = arith.constant 0.000000e+00 : f32
    %76 = vector.broadcast %cst_53 : f32 to vector<2x128xf32>
    %77 = arith.maximumf %75, %76 : vector<2x128xf32>
    %78 = arith.truncf %77 : vector<2x128xf32> to vector<2x128xbf16>
    %c0_54 = arith.constant 0 : index
    %c0_55 = arith.constant 0 : index
    %79 = vector.load %arg8[%c0_54, %c0_55] : memref<128x128xbf16, #tpu.memory_space<vmem>>, vector<128x128xbf16>
    %cst_56 = arith.constant dense<0.000000e+00> : vector<2x128xf32>
    %80 = tpu.matmul %78, %79, %cst_56 {dimension_numbers = #tpu.dot_dimension_numbers<[1], [0], [0], [1], [0, 0, 1, 1], [], []>} : vector<2x128xbf16>, vector<128x128xbf16>, vector<2x128xf32> -> vector<2x128xf32>
    %c0_57 = arith.constant 0 : index
    %c0_58 = arith.constant 0 : index
    %81 = vector.load %arg9[%c0_57, %c0_58] : memref<1x128xf32, #tpu.memory_space<vmem>>, vector<1x128xf32>
    %82 = vector.broadcast %81 : vector<1x128xf32> to vector<2x128xf32>
    %83 = arith.addf %80, %82 : vector<2x128xf32>
    %c0_59 = arith.constant 0 : index
    %c0_60 = arith.constant 0 : index
    %84 = vector.load %arg10[%c0_59, %c0_60] : memref<2x128xf32, #tpu.memory_space<vmem>>, vector<2x128xf32>
    tpu.vector_store %arg10[%c0_59, %c0_60], %83 {strides = array<i32>} : memref<2x128xf32, #tpu.memory_space<vmem>>, vector<2x128xf32>,
    return
  }
  func.func @transform_0(%arg0: i32) -> (i32, i32, i32) {
    %c0_i32 = arith.constant 0 : i32
    %c0_i32_0 = arith.constant 0 : i32
    %c0_i32_1 = arith.constant 0 : i32
    return %c0_i32, %arg0, %c0_i32_0 : i32, i32, i32
  }
  func.func @transform_1(%arg0: i32) -> (i32, i32) {
    %c0_i32 = arith.constant 0 : i32
    %c0_i32_0 = arith.constant 0 : i32
    %c0_i32_1 = arith.constant 0 : i32
    return %c0_i32, %c0_i32_0 : i32, i32
  }
  func.func @transform_2(%arg0: i32) -> (i32, i32) {
    %c0_i32 = arith.constant 0 : i32
    %c0_i32_0 = arith.constant 0 : i32
    %c0_i32_1 = arith.constant 0 : i32
    return %c0_i32, %c0_i32_0 : i32, i32
  }
  func.func @transform_3(%arg0: i32) -> (i32, i32) {
    %c0_i32 = arith.constant 0 : i32
    %c0_i32_0 = arith.constant 0 : i32
    %c0_i32_1 = arith.constant 0 : i32
    return %c0_i32, %c0_i32_0 : i32, i32
  }
  func.func @transform_4(%arg0: i32) -> (i32, i32) {
    %c0_i32 = arith.constant 0 : i32
    %c0_i32_0 = arith.constant 0 : i32
    %c0_i32_1 = arith.constant 0 : i32
    return %c0_i32, %c0_i32_0 : i32, i32
  }
  func.func @transform_5(%arg0: i32) -> (i32, i32, i32) {
    %c0_i32 = arith.constant 0 : i32
    %c0_i32_0 = arith.constant 0 : i32
    %c0_i32_1 = arith.constant 0 : i32
    %c0_i32_2 = arith.constant 0 : i32
    return %c0_i32, %c0_i32_0, %c0_i32_1 : i32, i32, i32
  }
  func.func @transform_6(%arg0: i32) -> (i32, i32) {
    %c0_i32 = arith.constant 0 : i32
    %c0_i32_0 = arith.constant 0 : i32
    %c0_i32_1 = arith.constant 0 : i32
    return %c0_i32, %c0_i32_0 : i32, i32
  }
  func.func @transform_7(%arg0: i32) -> (i32, i32) {
    %c0_i32 = arith.constant 0 : i32
    %c0_i32_0 = arith.constant 0 : i32
    %c0_i32_1 = arith.constant 0 : i32
    return %c0_i32, %c0_i32_0 : i32, i32
  }
  func.func @transform_8(%arg0: i32) -> (i32, i32) {
    %c0_i32 = arith.constant 0 : i32
    %c0_i32_0 = arith.constant 0 : i32
    %c0_i32_1 = arith.constant 0 : i32
    return %c0_i32, %c0_i32_0 : i32, i32
  }
  func.func @transform_9(%arg0: i32) -> (i32, i32) {
    %c0_i32 = arith.constant 0 : i32
    %c0_i32_0 = arith.constant 0 : i32
    return %arg0, %c0_i32 : i32, i32
  }
}

</mosaic_0001>

<bundles_post_ra>
// kernel: tile.13
= control target key start
LH: loop header
LB: loop body
LE: loop exit
PB: predicated region body
PF: predicated region fallthrough
CT: control target
= control target key end

     0   :  { %s34_s0 = inlined_call_operand.vmem [shape: f32[16], index: 0, kind: input, shape index: {}]   ;;  %s35_s1 = inlined_call_operand.vmem [shape: f32[24,16], index: 1, kind: output, shape index: {}]  }
   0x1   :  { %v4_v0 = vld [vmem:[%s34_s0] ss:$0 sm:$0xff] }
   0x2   :  { %5 = vst [vmem:[%s35_s1] sm:$0xff] %v4_v0  ;;  %10 = vst [vmem:[%s35_s1 + $0x8] sm:$0xff] %v4_v0 }
   0x3   :  { %11 = vst [vmem:[%s35_s1 + $0x10] sm:$0xff] %v4_v0 }

// kernel: tile.14
= control target key start
LH: loop header
LB: loop body
LE: loop exit
PB: predicated region body
PF: predicated region fallthrough
CT: control target
= control target key end

     0   :  { %s85_s8 = smov 112   ;;  %s86_s11 = smov 80   ;;  %vm3_vm0 = vcmask 130048   ;;  %vm9_vm1 = vcmask 1048448   ;;  %vm15_vm2 = vcmask 917248   ;;  %vm21_vm3 = vcmask 786048   ;;  %s135_s0 = inlined_call_operand.vmem [shape: f32[24,16], index: 0, kind: input, shape index: {}]   ;;  %s136_s1 = inlined_call_operand.vmem [shape: f32[1,384], index: 1, kind: output, shape index: {}]  }
   0x1   :  { %v69_v0 = vld [vmem:[%s135_s0 + $0x7] ss:$8 sm:$0x7]   ;;  %v71_v1 = vld [vmem:[%s135_s0 + $0x5] ss:$8 sm:$0x7]  }
   0x2   :  { %7 = vrot.lane.b32.xlu0 %v69_v0, %s85_s8  ;;  %19 = vrot.lane.b32.xlu1 %v71_v1, %s86_s11  ;;  %v70_v2 = vld [vmem:[%s135_s0 + $0x6] ss:$8 sm:$0x7]   ;;  %v72_v3 = vld [vmem:[%s135_s0 + $0x4] ss:$8 sm:$0x7]  }
   0x3   :  { %s87_s16 = smov 96   ;;  %v2_v4 = vld [vmem:[%s135_s0] ss:$8 sm:$0x7]   ;;  %s88_s19 = smov 64   ;;  %vm27_vm4 = vcmask 654848  }
   0x4   :  { %v73_v5 = vld [vmem:[%s135_s0 + $0x3] ss:$8 sm:$0x7]   ;;  %4 = vst.msk [vmem:[#allocation0] ss:$8 sm:$0x7] %vm3_vm0, %v2_v4  }
   0x5   :  { %v74_v6 = vld [vmem:[%s135_s0 + $0x2] ss:$8 sm:$0x7]   ;;  %s89_s24 = smov 48   ;;  %s90_s25 = smov 32   ;;  %vm33_vm5 = vcmask 523648  }
   0x6   :  { %13 = vrot.lane.b32.xlu0 %v70_v2, %s87_s16  ;;  %25 = vrot.lane.b32.xlu1 %v72_v3, %s88_s19  ;;  %v75_v7 = vld [vmem:[%s135_s0 + $0x1] ss:$8 sm:$0x7]   ;;  %s91_s0 = smov 16   ;;  %vm39_vm6 = vcmask 392448   ;;  %vm45_vm7 = vcmask 261248  }
   0xa   :  { %31 = vrot.lane.b32.xlu0 %v73_v5, %s89_s24  ;;  %37 = vrot.lane.b32.xlu1 %v74_v6, %s90_s25 }
   0xe   :  { %43 = vrot.lane.b32.xlu0 %v75_v7, %s91_s0 }
  0x74   :  { %v8_v8 = vpop.permute.xlu0 %7   ;;  %v20_v9 = vpop.permute.xlu1 %19  }
  0x75   :  { %10 = vst.msk [vmem:[#allocation0] ss:$8 sm:$0x7] %vm9_vm1, %v8_v8  }
  0x78   :  { %v14_v10 = vpop.permute.xlu0 %13   ;;  %v26_v11 = vpop.permute.xlu1 %25  }
  0x79   :  { %16 = vst.msk [vmem:[#allocation0] ss:$8 sm:$0x7] %vm15_vm2, %v14_v10  }
  0x7a   :  { %22 = vst.msk [vmem:[#allocation0] ss:$8 sm:$0x7] %vm21_vm3, %v20_v9  }
  0x7b   :  { %28 = vst.msk [vmem:[#allocation0] ss:$8 sm:$0x7] %vm27_vm4, %v26_v11  }
  0x7c   :  { %v32_v12 = vpop.permute.xlu0 %31   ;;  %v38_v13 = vpop.permute.xlu1 %37  }
  0x7d   :  { %34 = vst.msk [vmem:[#allocation0] ss:$8 sm:$0x7] %vm33_vm5, %v32_v12  }
  0x7e   :  { %40 = vst.msk [vmem:[#allocation0] ss:$8 sm:$0x7] %vm39_vm6, %v38_v13  }
  0x80   :  { %v44_v14 = vpop.permute.xlu0 %43  }
  0x81   :  { %46 = vst.msk [vmem:[#allocation0] ss:$8 sm:$0x7] %vm45_vm7, %v44_v14  }
  0x88   :  { %v51_v15 = vld [vmem:[#allocation0] sm:$0x1]  ;;  %v56_v16 = vld [vmem:[#allocation0 + $0x8] sm:$0x1]  ;;  %v62_v17 = vld [vmem:[#allocation0 + $0x10] sm:$0x1] }
  0x89   :  { %54 = vst [vmem:[%s136_s1] sm:$0x1] %v51_v15  ;;  %76 = vst [vmem:[%s136_s1 + $0x1] sm:$0x1] %v56_v16 }
  0x8a   :  { %77 = vst [vmem:[%s136_s1 + $0x2] sm:$0x1] %v62_v17 }

// kernel: _lambda_.2
= control target key start
LH: loop header
LB: loop body
LE: loop exit
PB: predicated region body
PF: predicated region fallthrough
CT: control target
= control target key end

     0   :  { %vm75_vm0 = vcmask 1041408   ;;  %vm76_vm1 = vcmask 1042432   ;;  %v758_v0 = vmov 0.0   ;;  %v759_v2 = vmov 65535   ;;  %s939_s1 = inlined_call_operand.vmem [shape: bf16[85,128], index: 1, kind: input, shape index: {}]   ;;  %s940_s0 = inlined_call_operand.vmem [shape: bf16[3,14,85], index: 0, kind: input, shape index: {}]   ;;  %s941_s2 = inlined_call_operand.vmem [shape: bf16[384,128], index: 2, kind: input, shape index: {}]   ;;  %s942_s3 = inlined_call_operand.vmem [shape: f32[1,128], index: 3, kind: input, shape index: {}]   ;;  %s943_s4 = inlined_call_operand.vmem [shape: bf16[14,128], index: 4, kind: output, shape index: {0}]   ;;  %s944_s5 = inlined_call_operand.vmem [shape: f32[1,2,128], index: 5, kind: output, shape index: {1}]  }
   0x1   :  { %654 = vmatprep.subr.bf16.mxu0 %v758_v0  ;;  %670 = vmatprep.subr.bf16.mxu1 %v758_v0  ;;  %v725_v1 = vld [vmem:[%s939_s1 + $0x28] ss:$0 sps:$4 sm:$0x77]   ;;  %v77_v3 = vsel %vm75_vm0, 4294967295, %v759_v2  ;;  %vm760_vm2 = vmmov 0   ;;  %v726_v6 = vld [vmem:[%s939_s1 + $0x20] sm:$0xff]  }
   0x2   :  { %v78_v4 = vsel %vm76_vm1, %v77_v3, 0  ;;  %666 = vmatprep.mubr.msk.bf16.mxu0 %vm760_vm2, %v758_v0  ;;  %682 = vmatprep.mubr.msk.bf16.mxu1 %vm760_vm2, %v758_v0  ;;  %v727_v7 = vld [vmem:[%s939_s1 + $0x18] sm:$0xff]   ;;  %v728_v8 = vld [vmem:[%s939_s1 + $0x10] sm:$0xff]   ;;  %v729_v9 = vld [vmem:[%s939_s1 + $0x8] sm:$0xff]   ;;  %vm71_vm3 = vcmask 695296   ;;  %vm527_vm4 = vcmask 1045504  }
   0x3   :  { %v80_v5 = vand.u32 %v725_v1, %v78_v4  ;;  %v730_v10 = vld [vmem:[%s939_s1] sm:$0xff]   ;;  %v734_v11 = vld [vmem:[%s941_s2 + $0x78] sm:$0xff]   ;;  %v732_v13 = vld [vmem:[%s940_s0 + $0x8] sm:$0x7f]   ;;  %vm546_vm5 = vcmask 1040384  }
   0x4   :  { %v731_v12 = vld [vmem:[%s940_s0] sm:$0x7f]   ;;  %v735_v14 = vld [vmem:[%s941_s2 + $0x38] sm:$0xff]   ;;  %v736_v15 = vld [vmem:[%s941_s2 + $0x70] sm:$0xff]  }
   0x5   :  { %655 = vmatpush3.bf16.msra.mxu0 %v80_v5  ;;  %671 = vmatpush3.bf16.msra.mxu1 %v80_v5  ;;  %v737_v16 = vld [vmem:[%s941_s2 + $0x30] sm:$0xff]   ;;  %v738_v17 = vld [vmem:[%s941_s2 + $0x68] sm:$0xff]   ;;  %v740_v19 = vld [vmem:[%s941_s2 + $0x60] sm:$0xff]  }
   0x6   :  { %656 = vmatprep.subr.bf16.mxu0 %v758_v0  ;;  %672 = vmatprep.subr.bf16.mxu1 %v758_v0  ;;  %v739_v18 = vld [vmem:[%s941_s2 + $0x28] sm:$0xff]   ;;  %v741_v20 = vld [vmem:[%s941_s2 + $0x20] sm:$0xff]   ;;  %v742_v21 = vld [vmem:[%s941_s2 + $0x58] sm:$0xff]  }
   0x7   :  { %v743_v22 = vld [vmem:[%s941_s2 + $0x18] sm:$0xff]   ;;  %v744_v23 = vld [vmem:[%s941_s2 + $0x50] sm:$0xff]   ;;  %v746_v26 = vld [vmem:[%s941_s2 + $0x48] sm:$0xff]  }
   0x8   :  { %v745_v24 = vld [vmem:[%s941_s2 + $0x10] sm:$0xff]   ;;  %v747_v27 = vld [vmem:[%s941_s2 + $0xb8] sm:$0xff]   ;;  %v748_v28 = vld [vmem:[%s941_s2 + $0x8] sm:$0xff]  }
   0x9   :  { %657 = vmatpush3.bf16.msra.mxu0 %v726_v6  ;;  %673 = vmatpush3.bf16.msra.mxu1 %v726_v6  ;;  %v733_v25 = vld [vmem:[%s940_s0 + $0x10] sm:$0x7f]   ;;  %v749_v29 = vld [vmem:[%s941_s2 + $0x40] sm:$0xff]   ;;  %v752_v32 = vld [vmem:[%s941_s2 + $0xa8] sm:$0xff]  }
   0xa   :  { %658 = vmatprep.subr.bf16.mxu0 %v758_v0  ;;  %674 = vmatprep.subr.bf16.mxu1 %v758_v0  ;;  %v750_v30 = vld [vmem:[%s941_s2 + $0xb0] sm:$0xff]   ;;  %v751_v31 = vld [vmem:[%s941_s2] sm:$0xff]   ;;  %v754_v34 = vld [vmem:[%s941_s2 + $0x98] sm:$0xff]  }
   0xb   :  { %v753_v33 = vld [vmem:[%s941_s2 + $0xa0] sm:$0xff]   ;;  %v755_v35 = vld [vmem:[%s941_s2 + $0x90] sm:$0xff]   ;;  %v756_v36 = vld [vmem:[%s941_s2 + $0x88] sm:$0xff]  }
   0xc   :  { %v757_v37 = vld [vmem:[%s941_s2 + $0x80] sm:$0xff]  }
   0xd   :  { %659 = vmatpush3.bf16.msra.mxu0 %v727_v7  ;;  %675 = vmatpush3.bf16.msra.mxu1 %v727_v7 }
   0xe   :  { %660 = vmatprep.subr.bf16.mxu0 %v758_v0  ;;  %676 = vmatprep.subr.bf16.mxu1 %v758_v0 }
  0x11   :  { %661 = vmatpush3.bf16.msra.mxu0 %v728_v8  ;;  %677 = vmatpush3.bf16.msra.mxu1 %v728_v8 }
  0x12   :  { %662 = vmatprep.subr.bf16.mxu0 %v758_v0  ;;  %678 = vmatprep.subr.bf16.mxu1 %v758_v0 }
  0x15   :  { %663 = vmatpush3.bf16.msra.mxu0 %v729_v9  ;;  %679 = vmatpush3.bf16.msra.mxu1 %v729_v9 }
  0x16   :  { %664 = vmatprep.subr.bf16.mxu0 %v758_v0  ;;  %680 = vmatprep.subr.bf16.mxu1 %v758_v0 }
  0x19   :  { %665 = vmatpush3.bf16.msra.mxu0 %v730_v10  ;;  %681 = vmatpush3.bf16.msra.mxu1 %v730_v10 }
  0x1a   :  { %686 = vmatprep.subr.bf16.mxu0 %v758_v0  ;;  %623 = vmatprep.subr.bf16.mxu1 %v734_v11 }
  0x1c   :  { %667 = vmatmul.mubr.msk.bf16.vlgmr.msra.gmra.mxu0 %vm71_vm3, %v731_v12  ;;  %683 = vmatmul.mubr.msk.bf16.vlgmr.msra.gmra.mxu1 %vm71_vm3, %v732_v13 }
  0x1d   :  { %687 = vmatpush3.bf16.msra.mxu0 %v80_v5  ;;  %698 = vmatprep.mubr.msk.bf16.mxu0 %vm760_vm2, %v758_v0 }
  0x1e   :  { %688 = vmatprep.subr.bf16.mxu0 %v758_v0  ;;  %624 = vmatpush3.bf16.msra.mxu1 %v735_v14 }
  0x1f   :  { %625 = vmatprep.subr.bf16.mxu1 %v736_v15 }
  0x21   :  { %689 = vmatpush3.bf16.msra.mxu0 %v726_v6 }
  0x22   :  { %690 = vmatprep.subr.bf16.mxu0 %v758_v0  ;;  %626 = vmatpush3.bf16.msra.mxu1 %v737_v16 }
  0x23   :  { %627 = vmatprep.subr.bf16.mxu1 %v738_v17 }
  0x25   :  { %691 = vmatpush3.bf16.msra.mxu0 %v727_v7 }
  0x26   :  { %692 = vmatprep.subr.bf16.mxu0 %v758_v0  ;;  %628 = vmatpush3.bf16.msra.mxu1 %v739_v18 }
  0x27   :  { %629 = vmatprep.subr.bf16.mxu1 %v740_v19 }
  0x29   :  { %693 = vmatpush3.bf16.msra.mxu0 %v728_v8 }
  0x2a   :  { %694 = vmatprep.subr.bf16.mxu0 %v758_v0  ;;  %630 = vmatpush3.bf16.msra.mxu1 %v741_v20 }
  0x2b   :  { %631 = vmatprep.subr.bf16.mxu1 %v742_v21 }
  0x2d   :  { %695 = vmatpush3.bf16.msra.mxu0 %v729_v9 }
  0x2e   :  { %696 = vmatprep.subr.bf16.mxu0 %v758_v0  ;;  %632 = vmatpush3.bf16.msra.mxu1 %v743_v22 }
  0x2f   :  { %633 = vmatprep.subr.bf16.mxu1 %v744_v23 }
  0x31   :  { %697 = vmatpush3.bf16.msra.mxu0 %v730_v10 }
  0x32   :  { %634 = vmatpush3.bf16.msra.mxu1 %v745_v24  ;;  %702 = vmatprep.subr.bf16.mxu0 %v758_v0 }
  0x33   :  { %635 = vmatprep.subr.bf16.mxu1 %v746_v26 }
  0x34   :  { %699 = vmatmul.mubr.msk.bf16.vlgmr.msra.gmra.mxu0 %vm71_vm3, %v733_v25 }
  0x35   :  { %718 = vmatprep.mubr.msk.bf16.mxu0 %vm760_vm2, %v758_v0  ;;  %703 = vmatpush3.bf16.msra.mxu0 %v747_v27 }
  0x36   :  { %636 = vmatpush3.bf16.msra.mxu1 %v748_v28  ;;  %704 = vmatprep.subr.bf16.mxu0 %v758_v0 }
  0x37   :  { %637 = vmatprep.subr.bf16.mxu1 %v749_v29 }
  0x39   :  { %705 = vmatpush3.bf16.msra.mxu0 %v750_v30 }
  0x3a   :  { %638 = vmatpush3.bf16.msra.mxu1 %v751_v31  ;;  %706 = vmatprep.subr.bf16.mxu0 %v758_v0 }
  0x3d   :  { %707 = vmatpush3.bf16.msra.mxu0 %v752_v32 }
  0x3e   :  { %708 = vmatprep.subr.bf16.mxu0 %v758_v0 }
  0x41   :  { %709 = vmatpush3.bf16.msra.mxu0 %v753_v33 }
  0x42   :  { %710 = vmatprep.subr.bf16.mxu0 %v758_v0 }
  0x45   :  { %711 = vmatpush3.bf16.msra.mxu0 %v754_v34 }
  0x46   :  { %712 = vmatprep.subr.bf16.mxu0 %v758_v0 }
  0x49   :  { %713 = vmatpush3.bf16.msra.mxu0 %v755_v35 }
  0x4a   :  { %714 = vmatprep.subr.bf16.mxu0 %v758_v0 }
  0x4d   :  { %715 = vmatpush3.bf16.msra.mxu0 %v756_v36 }
  0x4e   :  { %716 = vmatprep.subr.bf16.mxu0 %v758_v0  ;;  %v573_v0 = vld [vmem:[%s942_s3] ss:$0 sm:$0xff] }
  0x51   :  { %717 = vmatpush3.bf16.msra.mxu0 %v757_v37 }
  0xdc   :  { %v116_v38 = vpop.f32.mrf.mxu0  ;;  %v171_v39 = vpop.f32.mrf.mxu1 }
  0xdd   :  { %v178_v42 = vmax.f32 %v171_v39, 0.0  ;;  %v123_v45 = vmax.f32 %v116_v38, 0.0 }
  0xde   :  { %v668_v40 = vpop.f32.mrf.mxu0  ;;  %v684_v41 = vpop.f32.mrf.mxu1 }
  0xe0   :  { %v119_v43 = vpop.f32.mrf.mxu0  ;;  %v174_v44 = vpop.f32.mrf.mxu1 }
  0xe1   :  { %v124_v46 = vmax.f32 %v119_v43, 0.0  ;;  %v179_v47 = vmax.f32 %v174_v44, 0.0 }
  0xe2   :  { %v669_v48 = vpop.f32.mrf.mxu0  ;;  %v685_v49 = vpop.f32.mrf.mxu1 }
  0xe3   :  { %v125_v50 = vpack.c.bf16 %v124_v46, %v123_v45  ;;  %v180_v51 = vpack.c.bf16 %v179_v47, %v178_v42 }
  0xe5   :  { %467 = vmatprep.mubr.bf16.mxu1 %v180_v51 }
  0xe6   :  { %468 = vmatmul.mubr.bf16.vlgmr.msra.gmra.mxu1 %v125_v50 }
  0xf4   :  { %v226_v52 = vpop.f32.mrf.mxu0 }
  0xf5   :  { %v233_v55 = vmax.f32 %v226_v52, 0.0 }
  0xf6   :  { %v700_v53 = vpop.f32.mrf.mxu0 }
  0xf8   :  { %v229_v54 = vpop.f32.mrf.mxu0 }
  0xf9   :  { %v234_v56 = vmax.f32 %v229_v54, 0.0 }
  0xfa   :  { %v701_v57 = vpop.f32.mrf.mxu0 }
  0xfb   :  { %v235_v58 = vpack.c.bf16 %v234_v56, %v233_v55 }
  0xfd   :  { %719 = vmatmul.mubr.bf16.vlgmr.msra.gmra.mxu0 %v235_v58 }
 0x1a6   :  { %v639_v59 = vpop.f32.mrf.mxu1 }
 0x1a8   :  { %v640_v60 = vpop.f32.mrf.mxu1 }
 0x1a9   :  { %v641_v62 = vadd.f32 %v640_v60, %v639_v59 }
 0x1aa   :  { %v642_v61 = vpop.f32.mrf.mxu1 }
 0x1ab   :  { %v470_v2 = vadd.f32 %v641_v62, %v573_v0 }
 0x1ac   :  { %v643_v63 = vpop.f32.mrf.mxu1 }
 0x1ad   :  { %v644_v1 = vadd.f32 %v643_v63, %v642_v61 }
 0x1af   :  { %v473_v7 = vadd.f32 %v644_v1, %v573_v0 }
 0x1bd   :  { %v510_v3 = vpop.f32.mrf.mxu0 }
 0x1be   :  { %v511_v4 = vadd.f32 %v510_v3, %v470_v2 }
 0x1bf   :  { %v720_v5 = vpop.f32.mrf.mxu0 }
 0x1c0   :  { %v600_v6 = vpack.c.bf16 %v511_v4, %v511_v4  ;;  %v536_v14 = vmul.f32 %v511_v4, %v511_v4 }
 0x1c1   :  { %v513_v8 = vpop.f32.mrf.mxu0 }
 0x1c2   :  { %525 = vst [vmem:[%s943_s4] sm:$0xf] %v600_v6  ;;  %v514_v9 = vadd.f32 %v513_v8, %v473_v7 }
 0x1c3   :  { %v721_v10 = vpop.f32.mrf.mxu0 }
 0x1c4   :  { %v601_v11 = vpack.c.bf16 %v514_v9, %v514_v9  ;;  %v528_v12 = vsel %vm527_vm4, %v514_v9, 0.0  ;;  %v537_v13 = vmul.f32 %v514_v9, %v514_v9 }
 0x1c5   :  { %v529_v15 = vadd.f32 %v528_v12, %v511_v4 }
 0x1c6   :  { %526 = vst [vmem:[%s943_s4 + $0x4] sm:$0x7] %v601_v11  ;;  %v538_v16 = vsel %vm527_vm4, %v537_v13, 0.0 }
 0x1c7   :  { %v530_v17 = vrot.slane %v529_v15, 4  ;;  %v539_v18 = vadd.f32 %v538_v16, %v536_v14 }
 0x1c9   :  { %v531_v19 = vadd.f32 %v530_v17, %v529_v15  ;;  %v540_v20 = vrot.slane %v539_v18, 4 }
 0x1cb   :  { %v532_v21 = vrot.slane %v531_v19, 2  ;;  %v541_v22 = vadd.f32 %v540_v20, %v539_v18 }
 0x1cd   :  { %v533_v23 = vadd.f32 %v532_v21, %v531_v19  ;;  %v542_v24 = vrot.slane %v541_v22, 2 }
 0x1cf   :  { %v534_v25 = vrot.slane %v533_v23, 1  ;;  %v543_v26 = vadd.f32 %v542_v24, %v541_v22 }
 0x1d1   :  { %v544_v27 = vrot.slane %v543_v26, 1  ;;  %v535_v28 = vadd.f32 %v534_v25, %v533_v23 }
 0x1d3   :  { %v545_v29 = vadd.f32 %v544_v27, %v543_v26 }
 0x1d5   :  { %v547_v30 = vsel %vm546_vm5, %v535_v28, %v545_v29 }
 0x1d6   :  { %548 = vst [vmem:[%s944_s5] sm:$0x3] %v547_v30 }

// kernel: _lambda_.3
= control target key start
LH: loop header
LB: loop body
LE: loop exit
PB: predicated region body
PF: predicated region fallthrough
CT: control target
= control target key end

     0   :  { %v1522_v1 = vmov 0.0   ;;  %vm1523_vm0 = vmmov 0   ;;  %v38_v14 = vlaneseq  ;;  %v1524_v34 = vmov 1983009808   ;;  %s1988_s0 = inlined_call_operand.vmem [shape: bf16[3,2,384], index: 0, kind: input, shape index: {}]   ;;  %s1989_s1 = inlined_call_operand.vmem [shape: f32[1,384], index: 1, kind: input, shape index: {}]   ;;  %s1990_s2 = inlined_call_operand.vmem [shape: f32[1,384], index: 2, kind: input, shape index: {}]   ;;  %s1991_s3 = inlined_call_operand.vmem [shape: bf16[384,128], index: 3, kind: input, shape index: {}]   ;;  %s1992_s4 = inlined_call_operand.vmem [shape: f32[1,128], index: 4, kind: input, shape index: {}]   ;;  %s1993_s5 = inlined_call_operand.vmem [shape: bf16[3,128,128], index: 5, kind: input, shape index: {}]   ;;  %s1994_s6 = inlined_call_operand.vmem [shape: f32[1,128], index: 6, kind: input, shape index: {}]   ;;  %s1995_s7 = inlined_call_operand.vmem [shape: bf16[128,128], index: 7, kind: input, shape index: {}]   ;;  %s1996_s8 = inlined_call_operand.vmem [shape: f32[1,128], index: 8, kind: input, shape index: {}]   ;;  %s1997_s9 = inlined_call_operand.hbm [shape: f32[2,128], index: 9, kind: output, shape index: {}]  }
   0x1   :  { %v1579_v0 = vld [vmem:[%s1991_s3 + $0x78] sm:$0xff]   ;;  %1300 = vmatprep.subr.bf16.mxu1 %v1522_v1  ;;  %1316 = vmatprep.mubr.msk.bf16.mxu1 %vm1523_vm0, %v1522_v1  ;;  %v1599_v4 = vld [vmem:[%s1991_s3 + $0x70] sm:$0xff]   ;;  %v1617_v7 = vld [vmem:[%s1991_s3 + $0x68] sm:$0xff]   ;;  %v52_v35 = vunpack.c.l.s4 %v1524_v34 }
   0x2   :  { %v1585_v2 = vld [vmem:[%s1991_s3 + $0x38] sm:$0xff]   ;;  %1171 = vmatprep.subr.bf16.mxu0 %v1579_v0  ;;  %v1605_v5 = vld [vmem:[%s1991_s3 + $0x30] sm:$0xff]   ;;  %v1623_v8 = vld [vmem:[%s1991_s3 + $0x28] sm:$0xff]   ;;  %v39_v18 = vshrl.u32 %v38_v14, 7 }
   0x3   :  { %v1591_v3 = vld [vmem:[%s1991_s3 + $0xb8] sm:$0xff]   ;;  %1172 = vmatpush3.bf16.msra.mxu0 %v1585_v2  ;;  %v1612_v6 = vld [vmem:[%s1991_s3 + $0xb0] sm:$0xff]   ;;  %v1630_v9 = vld [vmem:[%s1991_s3 + $0xa8] sm:$0xff]   ;;  %v53_v41 = vunpack.c.0.s8 %v52_v35 }
   0x4   :  { %1301 = vmatpush3.bf16.msra.mxu1 %v1591_v3  ;;  %1173 = vmatprep.subr.bf16.mxu0 %v1599_v4  ;;  %v1636_v10 = vld [vmem:[%s1991_s3 + $0x60] sm:$0xff]   ;;  %v1654_v13 = vld [vmem:[%s1991_s3 + $0x58] sm:$0xff]   ;;  %v1673_v17 = vld [vmem:[%s1991_s3 + $0x50] sm:$0xff]   ;;  %v40_v22 = vsub.s32 0, %v39_v18  ;;  %v44_v23 = vsub.s32 1, %v39_v18  ;;  %v48_v25 = vsub.s32 2, %v39_v18 }
   0x5   :  { %1302 = vmatprep.subr.bf16.mxu1 %v1522_v1  ;;  %v1641_v11 = vld [vmem:[%s1991_s3 + $0x20] sm:$0xff]   ;;  %v1660_v15 = vld [vmem:[%s1991_s3 + $0x18] sm:$0xff]   ;;  %v1679_v19 = vld [vmem:[%s1991_s3 + $0x10] sm:$0xff]   ;;  %v1740_v45 = vsub.s32 %v53_v41, %v39_v18 }
   0x6   :  { %v1647_v12 = vld [vmem:[%s1991_s3 + $0xa0] sm:$0xff]   ;;  %v1666_v16 = vld [vmem:[%s1991_s3 + $0x98] sm:$0xff]   ;;  %v1685_v20 = vld [vmem:[%s1991_s3 + $0x90] sm:$0xff]  }
   0x7   :  { %1174 = vmatpush3.bf16.msra.mxu0 %v1605_v5  ;;  %v1692_v21 = vld [vmem:[%s1991_s3 + $0x48] sm:$0xff]   ;;  %v1711_v27 = vld [vmem:[%s1991_s3 + $0x40] sm:$0xff]  }
   0x8   :  { %1303 = vmatpush3.bf16.msra.mxu1 %v1612_v6  ;;  %1175 = vmatprep.subr.bf16.mxu0 %v1617_v7  ;;  %v1699_v24 = vld [vmem:[%s1991_s3 + $0x8] sm:$0xff]   ;;  %v36_v28 = vld [vmem:[%s1989_s1] sm:$0x7]  ;;  %v1103_v44 = vld [vmem:[%s1988_s0 + $0x3] sm:$0x7] }
   0x9   :  { %1304 = vmatprep.subr.bf16.mxu1 %v1522_v1  ;;  %v1706_v26 = vld [vmem:[%s1991_s3 + $0x88] sm:$0xff]   ;;  %v1720_v29 = vld [vmem:[%s1991_s3] sm:$0xff]   ;;  %v41_v30 = vrot.slane %v36_v28, %v40_v22  ;;  %v45_v31 = vrot.slane %v36_v28, %v44_v23  ;;  %v49_v39 = vrot.slane %v36_v28, %v48_v25  ;;  %v423_v47 = vunpack.c.l.bf16 %v1103_v44 }
   0xa   :  { %v68_v32 = vld [vmem:[%s1990_s2] sm:$0x7] }
   0xb   :  { %1176 = vmatpush3.bf16.msra.mxu0 %v1623_v8  ;;  %v1728_v33 = vld [vmem:[%s1991_s3 + $0x80] sm:$0xff]   ;;  %v73_v36 = vrot.slane %v68_v32, %v40_v22  ;;  %v77_v37 = vrot.slane %v68_v32, %v44_v23  ;;  %v50_v40 = vcombine.low %v41_v30, %v45_v31  ;;  %v81_v42 = vrot.slane %v68_v32, %v48_v25 }
   0xc   :  { %1305 = vmatpush3.bf16.msra.mxu1 %v1630_v9  ;;  %1177 = vmatprep.subr.bf16.mxu0 %v1636_v10  ;;  %v34_v38 = vld [vmem:[%s1988_s0] sm:$0x7]  ;;  %v64_v49 = vrot.slane %v49_v39, %v1740_v45 }
   0xd   :  { %1306 = vmatprep.subr.bf16.mxu1 %v1522_v1  ;;  %v82_v43 = vcombine.low %v73_v36, %v77_v37  ;;  %v35_v46 = vunpack.c.l.bf16 %v34_v38  ;;  %v57_v48 = vrot.slane %v50_v40, %v1740_v45  ;;  %v96_v51 = vrot.slane %v81_v42, %v1740_v45 }
   0xf   :  { %1178 = vmatpush3.bf16.msra.mxu0 %v1641_v11  ;;  %v89_v50 = vrot.slane %v82_v43, %v1740_v45  ;;  %v1750_v52 = vcombine.low %v57_v48, %v64_v49 }
  0x10   :  { %1307 = vmatpush3.bf16.msra.mxu1 %v1647_v12  ;;  %1179 = vmatprep.subr.bf16.mxu0 %v1654_v13 }
  0x11   :  { %1308 = vmatprep.subr.bf16.mxu1 %v1522_v1  ;;  %v1752_v53 = vcombine.low %v89_v50, %v96_v51  ;;  %v67_v54 = vmul.f32 %v1750_v52, %v35_v46  ;;  %v424_v55 = vmul.f32 %v423_v47, %v1750_v52 }
  0x13   :  { %1180 = vmatpush3.bf16.msra.mxu0 %v1660_v15  ;;  %v99_v56 = vadd.f32 %v1752_v53, %v67_v54  ;;  %v425_v57 = vadd.f32 %v424_v55, %v1752_v53 }
  0x14   :  { %1309 = vmatpush3.bf16.msra.mxu1 %v1666_v16  ;;  %1181 = vmatprep.subr.bf16.mxu0 %v1673_v17 }
  0x15   :  { %1310 = vmatprep.subr.bf16.mxu1 %v1522_v1  ;;  %v100_v58 = vmax.f32 %v99_v56, 0.0  ;;  %v426_v59 = vmax.f32 %v425_v57, 0.0 }
  0x17   :  { %1182 = vmatpush3.bf16.msra.mxu0 %v1679_v19  ;;  %v109_v60 = vrot.slane %v100_v58, %v1740_v45  ;;  %v102_v61 = vcombine.high %v100_v58, %v100_v58  ;;  %v435_v62 = vrot.slane %v426_v59, %v1740_v45 }
  0x18   :  { %1311 = vmatpush3.bf16.msra.mxu1 %v1685_v20  ;;  %1183 = vmatprep.subr.bf16.mxu0 %v1692_v21 }
  0x19   :  { %1312 = vmatprep.subr.bf16.mxu1 %v1522_v1  ;;  %v117_v63 = vcombine.high %v109_v60, %v109_v60  ;;  %v116_v14 = vrot.slane %v102_v61, %v1740_v45  ;;  %v443_v18 = vcombine.high %v435_v62, %v435_v62  ;;  %v121_v22 = vpack.c.bf16 %v109_v60, %v109_v60 }
  0x1b   :  { %1184 = vmatpush3.bf16.msra.mxu0 %v1699_v24  ;;  %v122_v23 = vpack.c.bf16 %v117_v63, %v117_v63  ;;  %v123_v25 = vpack.c.bf16 %v116_v14, %v116_v14  ;;  %v448_v28 = vpack.c.bf16 %v443_v18, %v443_v18 }
  0x1c   :  { %1313 = vmatpush3.bf16.msra.mxu1 %v1706_v26  ;;  %1185 = vmatprep.subr.bf16.mxu0 %v1711_v27 }
  0x1d   :  { %1314 = vmatprep.subr.bf16.mxu1 %v1522_v1  ;;  %355 = vmatprep.mubr.bf16.mxu0 %v122_v23 }
  0x1f   :  { %1186 = vmatpush3.bf16.msra.mxu0 %v1720_v29 }
  0x20   :  { %1315 = vmatpush3.bf16.msra.mxu1 %v1728_v33  ;;  %1202 = vmatprep.subr.bf16.mxu0 %v1579_v0 }
  0x21   :  { %1320 = vmatprep.subr.bf16.mxu1 %v1522_v1 }
  0x22   :  { %356 = vmatmul.mubr.bf16.vlgmr.msra.gmra.mxu0 %v121_v22 }
  0x23   :  { %1317 = vmatmul.mubr.bf16.vlgmr.msra.gmra.mxu1 %v123_v25 }
  0x24   :  { %1321 = vmatpush3.bf16.msra.mxu1 %v1591_v3 }
  0x25   :  { %14 = vsyncpa [#allocation3], 0  ;;  %1203 = vmatpush3.bf16.msra.mxu0 %v1585_v2  ;;  %1322 = vmatprep.subr.bf16.mxu1 %v1522_v1  ;;  %v428_v30 = vcombine.high %v426_v59, %v426_v59  ;;  %v447_v34 = vpack.c.bf16 %v435_v62, %v435_v62  ;;  %v1468_v35 = vld [vmem:[%s1993_s5 + $0x38] sm:$0xff]   ;;  %v1469_v36 = vld [vmem:[%s1993_s5 + $0x30] sm:$0xff]   ;;  %s1525_s18 = smov [#allocation2]  }
  0x26   :  { %1204 = vmatprep.subr.bf16.mxu0 %v1599_v4  ;;  %482 = vmatprep.mubr.bf16.mxu0 %v448_v28  ;;  %v1470_v37 = vld [vmem:[%s1993_s5 + $0x28] sm:$0xff]   ;;  %v1471_v38 = vld [vmem:[%s1993_s5 + $0x20] sm:$0xff]   ;;  %v1472_v39 = vld [vmem:[%s1993_s5 + $0x18] sm:$0xff]  }
  0x27   :  { %1336 = vmatprep.mubr.msk.bf16.mxu1 %vm1523_vm0, %v1522_v1  ;;  %v442_v31 = vrot.slane %v428_v30, %v1740_v45  ;;  %v1473_v40 = vld [vmem:[%s1993_s5 + $0x10] sm:$0xff]   ;;  %v1474_v41 = vld [vmem:[%s1993_s5 + $0x8] sm:$0xff]   ;;  %v1475_v42 = vld [vmem:[%s1993_s5] sm:$0xff]  }
  0x28   :  { %1323 = vmatpush3.bf16.msra.mxu1 %v1612_v6  ;;  %v1476_v43 = vld [vmem:[%s1993_s5 + $0x78] sm:$0xff]   ;;  %v1477_v44 = vld [vmem:[%s1993_s5 + $0x70] sm:$0xff]   ;;  %v1478_v46 = vld [vmem:[%s1993_s5 + $0x68] sm:$0xff]  }
  0x29   :  { %1205 = vmatpush3.bf16.msra.mxu0 %v1605_v5  ;;  %1324 = vmatprep.subr.bf16.mxu1 %v1522_v1  ;;  %v449_v32 = vpack.c.bf16 %v442_v31, %v442_v31  ;;  %v1479_v47 = vld [vmem:[%s1993_s5 + $0x60] sm:$0xff]   ;;  %v1480_v48 = vld [vmem:[%s1993_s5 + $0x58] sm:$0xff]   ;;  %v1481_v49 = vld [vmem:[%s1993_s5 + $0x50] sm:$0xff]  }
  0x2a   :  { %1206 = vmatprep.subr.bf16.mxu0 %v1617_v7  ;;  %v1482_v50 = vld [vmem:[%s1993_s5 + $0x48] sm:$0xff]   ;;  %v1483_v51 = vld [vmem:[%s1993_s5 + $0x40] sm:$0xff]  }
  0x2b   :  { %v1867_v57 = vld [vmem:[%s1992_s4] ss:$0 sm:$0xff] }
  0x2c   :  { %1325 = vmatpush3.bf16.msra.mxu1 %v1630_v9 }
  0x2d   :  { %1207 = vmatpush3.bf16.msra.mxu0 %v1623_v8  ;;  %1326 = vmatprep.subr.bf16.mxu1 %v1522_v1 }
  0x2e   :  { %1208 = vmatprep.subr.bf16.mxu0 %v1636_v10 }
  0x30   :  { %1327 = vmatpush3.bf16.msra.mxu1 %v1647_v12 }
  0x31   :  { %1209 = vmatpush3.bf16.msra.mxu0 %v1641_v11  ;;  %1328 = vmatprep.subr.bf16.mxu1 %v1522_v1 }
  0x32   :  { %1210 = vmatprep.subr.bf16.mxu0 %v1654_v13 }
  0x34   :  { %1329 = vmatpush3.bf16.msra.mxu1 %v1666_v16 }
  0x35   :  { %1211 = vmatpush3.bf16.msra.mxu0 %v1660_v15  ;;  %1330 = vmatprep.subr.bf16.mxu1 %v1522_v1 }
  0x36   :  { %1212 = vmatprep.subr.bf16.mxu0 %v1673_v17 }
  0x38   :  { %1331 = vmatpush3.bf16.msra.mxu1 %v1685_v20 }
  0x39   :  { %1213 = vmatpush3.bf16.msra.mxu0 %v1679_v19  ;;  %1332 = vmatprep.subr.bf16.mxu1 %v1522_v1 }
  0x3a   :  { %1214 = vmatprep.subr.bf16.mxu0 %v1692_v21 }
  0x3c   :  { %1333 = vmatpush3.bf16.msra.mxu1 %v1706_v26 }
  0x3d   :  { %1215 = vmatpush3.bf16.msra.mxu0 %v1699_v24  ;;  %1334 = vmatprep.subr.bf16.mxu1 %v1522_v1 }
  0x3e   :  { %1216 = vmatprep.subr.bf16.mxu0 %v1711_v27 }
  0x40   :  { %1335 = vmatpush3.bf16.msra.mxu1 %v1728_v33 }
  0x41   :  { %1217 = vmatpush3.bf16.msra.mxu0 %v1720_v29  ;;  %1360 = vmatprep.subr.bf16.mxu1 %v1522_v1 }
  0x42   :  { %1340 = vmatprep.subr.bf16.mxu0 %v1522_v1 }
  0x43   :  { %1337 = vmatmul.mubr.bf16.vlgmr.msra.gmra.mxu1 %v449_v32 }
  0x44   :  { %483 = vmatmul.mubr.bf16.vlgmr.msra.gmra.mxu0 %v447_v34  ;;  %1361 = vmatpush3.bf16.msra.mxu1 %v1468_v35 }
  0x45   :  { %1362 = vmatprep.subr.bf16.mxu1 %v1522_v1  ;;  %1376 = vmatprep.mubr.msk.bf16.mxu1 %vm1523_vm0, %v1522_v1 }
  0x46   :  { %1356 = vmatprep.mubr.msk.bf16.mxu0 %vm1523_vm0, %v1522_v1  ;;  %1341 = vmatpush3.bf16.msra.mxu0 %v1476_v43 }
  0x47   :  { %1342 = vmatprep.subr.bf16.mxu0 %v1522_v1 }
  0x48   :  { %1363 = vmatpush3.bf16.msra.mxu1 %v1469_v36 }
  0x49   :  { %1364 = vmatprep.subr.bf16.mxu1 %v1522_v1 }
  0x4a   :  { %1343 = vmatpush3.bf16.msra.mxu0 %v1477_v44 }
  0x4b   :  { %1344 = vmatprep.subr.bf16.mxu0 %v1522_v1 }
  0x4c   :  { %1365 = vmatpush3.bf16.msra.mxu1 %v1470_v37 }
  0x4d   :  { %1366 = vmatprep.subr.bf16.mxu1 %v1522_v1 }
  0x4e   :  { %1345 = vmatpush3.bf16.msra.mxu0 %v1478_v46 }
  0x4f   :  { %1346 = vmatprep.subr.bf16.mxu0 %v1522_v1 }
  0x50   :  { %1367 = vmatpush3.bf16.msra.mxu1 %v1471_v38 }
  0x51   :  { %1368 = vmatprep.subr.bf16.mxu1 %v1522_v1 }
  0x52   :  { %1347 = vmatpush3.bf16.msra.mxu0 %v1479_v47 }
  0x53   :  { %1348 = vmatprep.subr.bf16.mxu0 %v1522_v1 }
  0x54   :  { %1369 = vmatpush3.bf16.msra.mxu1 %v1472_v39 }
  0x55   :  { %1370 = vmatprep.subr.bf16.mxu1 %v1522_v1 }
  0x56   :  { %1349 = vmatpush3.bf16.msra.mxu0 %v1480_v48 }
  0x57   :  { %1350 = vmatprep.subr.bf16.mxu0 %v1522_v1 }
  0x58   :  { %1371 = vmatpush3.bf16.msra.mxu1 %v1473_v40 }
  0x59   :  { %1372 = vmatprep.subr.bf16.mxu1 %v1522_v1 }
  0x5a   :  { %1351 = vmatpush3.bf16.msra.mxu0 %v1481_v49 }
  0x5b   :  { %1352 = vmatprep.subr.bf16.mxu0 %v1522_v1 }
  0x5c   :  { %1373 = vmatpush3.bf16.msra.mxu1 %v1474_v41 }
  0x5d   :  { %1374 = vmatprep.subr.bf16.mxu1 %v1522_v1 }
  0x5e   :  { %1353 = vmatpush3.bf16.msra.mxu0 %v1482_v50 }
  0x5f   :  { %1354 = vmatprep.subr.bf16.mxu0 %v1522_v1 }
  0x60   :  { %1375 = vmatpush3.bf16.msra.mxu1 %v1475_v42 }
  0x61   :  { %1380 = vmatprep.subr.bf16.mxu1 %v1522_v1 }
  0x62   :  { %1355 = vmatpush3.bf16.msra.mxu0 %v1483_v51 }
  0x63   :  { %1251 = vmatprep.subr.bf16.mxu0 %v1579_v0  ;;  %v1136_v0 = vld [vmem:[%s1988_s0 + $0x6] sm:$0x7] }
  0x64   :  { %v727_v25 = vunpack.c.l.bf16 %v1136_v0  ;;  %v1499_v0 = vld [vmem:[%s1995_s7] sm:$0xff]  }
  0x66   :  { %v728_v28 = vmul.f32 %v727_v25, %v1750_v52 }
  0xe2   :  { %v1187_v55 = vpop.f32.mrf.mxu0 }
  0xe3   :  { %v397_v54 = vpop.f32.mrf.mxu1 }
  0xe4   :  { %v1188_v58 = vpop.f32.mrf.mxu0 }
  0xe5   :  { %v1318_v56 = vpop.f32.mrf.mxu1  ;;  %v1189_v59 = vadd.f32 %v1188_v58, %v1187_v55 }
  0xe6   :  { %v1190_v61 = vpop.f32.mrf.mxu0 }
  0xe7   :  { %v400_v60 = vpop.f32.mrf.mxu1  ;;  %v358_v62 = vadd.f32 %v1189_v59, %v1867_v57 }
  0xe8   :  { %v1191_v14 = vpop.f32.mrf.mxu0 }
  0xe9   :  { %v1319_v63 = vpop.f32.mrf.mxu1  ;;  %v398_v18 = vadd.f32 %v397_v54, %v358_v62 }
  0xeb   :  { %v403_v22 = vmax.f32 %v398_v18, 0.0 }
  0xed   :  { %v404_v23 = vpack.c.bf16 %v403_v22, %v403_v22 }
  0xef   :  { %1377 = vmatmul.mubr.bf16.vlgmr.msra.gmra.mxu1 %v404_v23  ;;  %v1498_v23 = vld [vmem:[%s1995_s7 + $0x8] sm:$0xff]  }
  0xf0   :  { %1381 = vmatpush3.bf16.msra.mxu1 %v1591_v3  ;;  %1396 = vmatprep.mubr.msk.bf16.mxu1 %vm1523_vm0, %v1522_v1  ;;  %v729_v3 = vadd.f32 %v728_v28, %v1752_v53 }
  0xf1   :  { %1382 = vmatprep.subr.bf16.mxu1 %v1522_v1 }
  0xf2   :  { %v730_v30 = vmax.f32 %v729_v3, 0.0 }
  0xf4   :  { %1383 = vmatpush3.bf16.msra.mxu1 %v1612_v6  ;;  %v732_v34 = vcombine.high %v730_v30, %v730_v30 }
  0xf5   :  { %1384 = vmatprep.subr.bf16.mxu1 %v1522_v1 }
  0xf8   :  { %1385 = vmatpush3.bf16.msra.mxu1 %v1630_v9  ;;  %v739_v9 = vrot.slane %v730_v30, %v1740_v45 }
  0xf9   :  { %1386 = vmatprep.subr.bf16.mxu1 %v1522_v1 }
  0xfa   :  { %v747_v39 = vcombine.high %v739_v9, %v739_v9 }
  0xfc   :  { %1387 = vmatpush3.bf16.msra.mxu1 %v1647_v12  ;;  %v752_v42 = vpack.c.bf16 %v747_v39, %v747_v39 }
  0xfd   :  { %1388 = vmatprep.subr.bf16.mxu1 %v1522_v1 }
 0x100   :  { %1389 = vmatpush3.bf16.msra.mxu1 %v1666_v16  ;;  %v746_v16 = vrot.slane %v732_v34, %v1740_v45 }
 0x101   :  { %1390 = vmatprep.subr.bf16.mxu1 %v1522_v1 }
 0x102   :  { %v753_v41 = vpack.c.bf16 %v746_v16, %v746_v16 }
 0x103   :  { %v524_v31 = vpop.f32.mrf.mxu1 }
 0x104   :  { %v1218_v6 = vpop.f32.mrf.mxu0  ;;  %1391 = vmatpush3.bf16.msra.mxu1 %v1685_v20 }
 0x105   :  { %v1338_v32 = vpop.f32.mrf.mxu1  ;;  %1392 = vmatprep.subr.bf16.mxu1 %v1522_v1 }
 0x106   :  { %v1219_v52 = vpop.f32.mrf.mxu0 }
 0x107   :  { %v1220_v35 = vadd.f32 %v1219_v52, %v1218_v6  ;;  %v527_v53 = vpop.f32.mrf.mxu1 }
 0x108   :  { %v1221_v12 = vpop.f32.mrf.mxu0  ;;  %1393 = vmatpush3.bf16.msra.mxu1 %v1706_v26  ;;  %v1496_v26 = vld [vmem:[%s1995_s7 + $0x18] sm:$0xff]  }
 0x109   :  { %v485_v36 = vadd.f32 %v1220_v35, %v1867_v57  ;;  %v1339_v37 = vpop.f32.mrf.mxu1  ;;  %1394 = vmatprep.subr.bf16.mxu1 %v1522_v1 }
 0x10a   :  { %v1222_v38 = vpop.f32.mrf.mxu0 }
 0x10b   :  { %v525_v40 = vadd.f32 %v524_v31, %v485_v36 }
 0x10c   :  { %1395 = vmatpush3.bf16.msra.mxu1 %v1728_v33 }
 0x10d   :  { %v530_v20 = vmax.f32 %v525_v40, 0.0  ;;  %1420 = vmatprep.subr.bf16.mxu1 %v1522_v1 }
 0x10f   :  { %v531_v43 = vpack.c.bf16 %v530_v20, %v530_v20  ;;  %1397 = vmatmul.mubr.bf16.vlgmr.msra.gmra.mxu1 %v753_v41 }
 0x110   :  { %1436 = vmatprep.mubr.msk.bf16.mxu1 %vm1523_vm0, %v1522_v1 }
 0x111   :  { %1357 = vmatmul.mubr.bf16.vlgmr.msra.gmra.mxu0 %v531_v43 }
 0x112   :  { %1252 = vmatpush3.bf16.msra.mxu0 %v1585_v2  ;;  %786 = vmatprep.mubr.bf16.mxu0 %v752_v42  ;;  %v751_v2 = vpack.c.bf16 %v739_v9, %v739_v9 }
 0x113   :  { %1253 = vmatprep.subr.bf16.mxu0 %v1599_v4  ;;  %v1484_v4 = vld [vmem:[%s1993_s5 + $0xb8] sm:$0xff]  }
 0x116   :  { %1254 = vmatpush3.bf16.msra.mxu0 %v1605_v5  ;;  %v1485_v5 = vld [vmem:[%s1993_s5 + $0xb0] sm:$0xff]  }
 0x117   :  { %1255 = vmatprep.subr.bf16.mxu0 %v1617_v7  ;;  %v1486_v7 = vld [vmem:[%s1993_s5 + $0xa8] sm:$0xff]  }
 0x11a   :  { %1256 = vmatpush3.bf16.msra.mxu0 %v1623_v8  ;;  %v1487_v8 = vld [vmem:[%s1993_s5 + $0xa0] sm:$0xff]  }
 0x11b   :  { %1257 = vmatprep.subr.bf16.mxu0 %v1636_v10  ;;  %v1488_v10 = vld [vmem:[%s1993_s5 + $0x98] sm:$0xff]  }
 0x11e   :  { %1258 = vmatpush3.bf16.msra.mxu0 %v1641_v11  ;;  %v1489_v11 = vld [vmem:[%s1993_s5 + $0x90] sm:$0xff]  }
 0x11f   :  { %1259 = vmatprep.subr.bf16.mxu0 %v1654_v13  ;;  %v1490_v13 = vld [vmem:[%s1993_s5 + $0x88] sm:$0xff]  }
 0x122   :  { %1260 = vmatpush3.bf16.msra.mxu0 %v1660_v15  ;;  %v1491_v15 = vld [vmem:[%s1993_s5 + $0x80] sm:$0xff]  }
 0x123   :  { %1261 = vmatprep.subr.bf16.mxu0 %v1673_v17  ;;  %v1492_v17 = vld [vmem:[%s1995_s7 + $0x38] sm:$0xff]  }
 0x124   :  { %1421 = vmatpush3.bf16.msra.mxu1 %v1492_v17 }
 0x125   :  { %1422 = vmatprep.subr.bf16.mxu1 %v1522_v1 }
 0x126   :  { %1262 = vmatpush3.bf16.msra.mxu0 %v1679_v19  ;;  %v1493_v19 = vld [vmem:[%s1995_s7 + $0x30] sm:$0xff]  }
 0x127   :  { %1263 = vmatprep.subr.bf16.mxu0 %v1692_v21  ;;  %v1494_v21 = vld [vmem:[%s1995_s7 + $0x28] sm:$0xff]  }
 0x128   :  { %1423 = vmatpush3.bf16.msra.mxu1 %v1493_v19 }
 0x129   :  { %1424 = vmatprep.subr.bf16.mxu1 %v1522_v1 }
 0x12a   :  { %1264 = vmatpush3.bf16.msra.mxu0 %v1699_v24  ;;  %v1495_v24 = vld [vmem:[%s1995_s7 + $0x20] sm:$0xff]  }
 0x12b   :  { %1265 = vmatprep.subr.bf16.mxu0 %v1711_v27  ;;  %v1497_v27 = vld [vmem:[%s1995_s7 + $0x10] sm:$0xff]   ;;  %s1070_s7 = sshll.u32 %s1525_s18, 4  ;;  %s1071_s7 = int_to_ptr.vmem [resolvable:$true] %s1070_s7 }
 0x12c   :  { %1425 = vmatpush3.bf16.msra.mxu1 %v1494_v21  ;;  %p1505_p1 = scmp.lt.s32.totalorder %s1071_s7, %s1071_s7 }
 0x12d   :  { %1426 = vmatprep.subr.bf16.mxu1 %v1522_v1 }
 0x12e   :  { %1266 = vmatpush3.bf16.msra.mxu0 %v1720_v29 }
 0x12f   :  { %1400 = vmatprep.subr.bf16.mxu0 %v1522_v1 }
 0x130   :  { %1427 = vmatpush3.bf16.msra.mxu1 %v1495_v24 }
 0x131   :  { %787 = vmatmul.mubr.bf16.vlgmr.msra.gmra.mxu0 %v751_v2  ;;  %1428 = vmatprep.subr.bf16.mxu1 %v1522_v1 }
 0x132   :  { %1416 = vmatprep.mubr.msk.bf16.mxu0 %vm1523_vm0, %v1522_v1  ;;  %1401 = vmatpush3.bf16.msra.mxu0 %v1484_v4 }
 0x133   :  { %1402 = vmatprep.subr.bf16.mxu0 %v1522_v1 }
 0x134   :  { %1429 = vmatpush3.bf16.msra.mxu1 %v1496_v26 }
 0x135   :  { %1430 = vmatprep.subr.bf16.mxu1 %v1522_v1 }
 0x136   :  { %1403 = vmatpush3.bf16.msra.mxu0 %v1485_v5 }
 0x137   :  { %1404 = vmatprep.subr.bf16.mxu0 %v1522_v1 }
 0x138   :  { %1431 = vmatpush3.bf16.msra.mxu1 %v1497_v27 }
 0x139   :  { %1432 = vmatprep.subr.bf16.mxu1 %v1522_v1 }
 0x13a   :  { %1405 = vmatpush3.bf16.msra.mxu0 %v1486_v7 }
 0x13b   :  { %1406 = vmatprep.subr.bf16.mxu0 %v1522_v1 }
 0x13c   :  { %1433 = vmatpush3.bf16.msra.mxu1 %v1498_v23 }
 0x13d   :  { %1434 = vmatprep.subr.bf16.mxu1 %v1522_v1 }
 0x13e   :  { %1407 = vmatpush3.bf16.msra.mxu0 %v1487_v8 }
 0x13f   :  { %1408 = vmatprep.subr.bf16.mxu0 %v1522_v1 }
 0x140   :  { %1435 = vmatpush3.bf16.msra.mxu1 %v1499_v0 }
 0x142   :  { %1409 = vmatpush3.bf16.msra.mxu0 %v1488_v10 }
 0x143   :  { %1410 = vmatprep.subr.bf16.mxu0 %v1522_v1 }
 0x146   :  { %1411 = vmatpush3.bf16.msra.mxu0 %v1489_v11 }
 0x147   :  { %1412 = vmatprep.subr.bf16.mxu0 %v1522_v1 }
 0x14a   :  { %1413 = vmatpush3.bf16.msra.mxu0 %v1490_v13 }
 0x14b   :  { %1414 = vmatprep.subr.bf16.mxu0 %v1522_v1  ;;  %v1162_v1 = vld [vmem:[%s1996_s8] ss:$0 sm:$0xff] }
 0x14e   :  { %1415 = vmatpush3.bf16.msra.mxu0 %v1491_v15 }
 0x1af   :  { %v719_v29 = vpop.f32.mrf.mxu1 }
 0x1b1   :  { %v1378_v33 = vpop.f32.mrf.mxu1 }
 0x1b3   :  { %v722_v45 = vpop.f32.mrf.mxu1 }
 0x1b5   :  { %v1379_v44 = vpop.f32.mrf.mxu1 }
 0x1cf   :  { %v828_v47 = vpop.f32.mrf.mxu1 }
 0x1d1   :  { %v631_v46 = vpop.f32.mrf.mxu0  ;;  %v1398_v50 = vpop.f32.mrf.mxu1 }
 0x1d2   :  { %v720_v48 = vadd.f32 %v719_v29, %v631_v46 }
 0x1d3   :  { %v1358_v49 = vpop.f32.mrf.mxu0  ;;  %v831_v54 = vpop.f32.mrf.mxu1 }
 0x1d5   :  { %v634_v51 = vpop.f32.mrf.mxu0  ;;  %v1399_v56 = vpop.f32.mrf.mxu1 }
 0x1d7   :  { %v1359_v55 = vpop.f32.mrf.mxu0 }
 0x1f1   :  { %v1267_v58 = vpop.f32.mrf.mxu0 }
 0x1f3   :  { %v1268_v59 = vpop.f32.mrf.mxu0 }
 0x1f4   :  { %v1269_v60 = vadd.f32 %v1268_v59, %v1267_v58 }
 0x1f5   :  { %v1270_v61 = vpop.f32.mrf.mxu0 }
 0x1f6   :  { %v789_v62 = vadd.f32 %v1269_v60, %v1867_v57  ;;  %v1161_v57 = vld [vmem:[%s1994_s6] ss:$0 sm:$0xff]  ;;  %s1500_s6 = scalar_lea.vmem %s1071_s7, 32 }
 0x1f7   :  { %v1271_v63 = vpop.f32.mrf.mxu0  ;;  %p1501_p0 = scmp.ne.s32.totalorder %s1071_s7, %s1500_s6  ;;  %p1506_p2 = scmp.lt.s32.totalorder %s1500_s6, %s1500_s6 }
 0x1f8   :  { %v829_v14 = vadd.f32 %v828_v47, %v789_v62 }
 0x1f9   :  { %p1507_p3 = por %p1506_p2, %p1505_p1 }
 0x1fa   :  { %v834_v18 = vmax.f32 %v829_v14, 0.0 }
 0x1fb   :  { %p1508_p4 = pnand %p1507_p3, %p1501_p0 }
 0x1fc   :  { %v835_v22 = vpack.c.bf16 %v834_v18, %v834_v18 }
 0x1fe   :  { %1417 = vmatmul.mubr.bf16.vlgmr.msra.gmra.mxu0 %v835_v22 }
 0x2be   :  { %v935_v25 = vpop.f32.mrf.mxu0 }
 0x2bf   :  { %v941_v28 = vadd.f32 %v935_v25, %v720_v48 }
 0x2c0   :  { %v1418_v3 = vpop.f32.mrf.mxu0 }
 0x2c1   :  { %v949_v30 = vadd.f32 %v1161_v57, %v941_v28 }
 0x2c2   :  { %v938_v31 = vpop.f32.mrf.mxu0 }
 0x2c3   :  { %v950_v6 = vmax.f32 %v949_v30, 0.0 }
 0x2c4   :  { %v1419_v32 = vpop.f32.mrf.mxu0 }
 0x2c5   :  { %v951_v34 = vpack.c.bf16 %v950_v6, %v950_v6 }
 0x2c7   :  { %1437 = vmatmul.mubr.bf16.vlgmr.msra.gmra.mxu1 %v951_v34 }
 0x387   :  { %v1057_v52 = vpop.f32.mrf.mxu1 }
 0x388   :  { %v1058_v9 = vadd.f32 %v1162_v1, %v1057_v52 }
 0x389   :  { %v1438_v35 = vpop.f32.mrf.mxu1 }
 0x38a   :  { %1063 = vst [vmem:[#allocation2] sm:$0x3] %v1058_v9 }
 0x38b   :  { %v1060_v53 = vpop.f32.mrf.mxu1 }
 0x38c   :  { %1511 = shalt.err (!%p1508_p4)
}
 0x38d   :  { %1073 = dma.vmem_to_hbm [thread:$0]  %s1071_s7, 32, %s1997_s9, [#allocation3]   ;;  %v1439_v12 = vpop.f32.mrf.mxu1 }
 0x38e   :  { %1520 = dma.done.wait [#allocation3], 32  }
 0x38f   :  { %1521 = vsyncadd [#allocation3], 4294967264 }
 0x390   :  { %1077 = vsyncpa [#allocation3], 1 }

</bundles_post_ra>
